<compile_context>
chip_gen: v6e
topology: v6e:2x2x1
jax: 0.10.0
libtpu: 0.0.40
codegen_flags: <defaults>
</compile_context>

<pallas_src>
import functools
import math

import jax
import jax.numpy as jnp
import numpy as np
from jax.experimental import pallas as pl
from jax.experimental.pallas import tpu as pltpu


# --------------------------------------------------------------------------
# Per-tap 0/1 validity masks: mask[tap, 0, n] = 1 iff output pixel n (flattened
# as b*H*W + y*W + x) has an in-bounds conv source under kernel tap `tap`.
# --------------------------------------------------------------------------
def _build_tap_masks(batch, height, width, k):
    n = batch * height * width
    masks = np.zeros((k * k, 1, n), np.float32)
    for ky in range(k):
        for kx in range(k):
            tap = ky * k + kx
            dy, dx = ky - k // 2, kx - k // 2
            for b in range(batch):
                for y in range(height):
                    for x in range(width):
                        if 0 <= y + dy < height and 0 <= x + dx < width:
                            masks[tap, 0, b * height * width + y * width + x] = 1.0
    return masks


# --------------------------------------------------------------------------
# Single fused kernel: whole recurrence + dense tail, invoked once (no grid).
# --------------------------------------------------------------------------
def _fused_kernel(*refs, seq_len, batch, hw, hid, n_taps, k, width, n_mlp):
    n_fixed = 13
    (x_ref, x2_ref, wxs_ref, whs_ref, cb_ref, mask_ref,
     w1_ref, b1_ref, w2_ref, b2_ref, wa_ref, wb_ref, bm0_ref) = refs[:n_fixed]
    tail_refs = refs[n_fixed:n_fixed + 2 * (n_mlp - 1)]
    out_ref = refs[-1]

    n = batch * hw
    gdim = 4 * hid

    # Lane shift per tap: output pixel pulls from lane (pixel + dy*W + dx).
    offsets = [(ky - k // 2) * width + (kx - k // 2)
               for ky in range(k) for kx in range(k)]

    # Hoist mask loads + sublane broadcast out of the time loop (reused each step).
    mask_bc = {tap: jnp.broadcast_to(mask_ref[tap], (gdim, n))
               for tap in range(n_taps) if offsets[tap] != 0}

    # x-path gate pre-activations for ALL timesteps in ONE MXU matmul
    # (off the serial recurrence chain): (n_taps*4*hid, cin) @ (cin, T*N).
    gx_all = jnp.dot(wxs_ref[...], x_ref[...], preferred_element_type=jnp.float32)

    bias = cb_ref[...]                       # (4*hid, 1), lane-broadcast on add
    h = None
    c = None
    for t in range(seq_len):                 # fully unrolled; h/c live in vregs
        gx_t = gx_all[:, t * n:(t + 1) * n]
        if h is None:                        # h == 0 at t=0: skip the Wh matmul
            u_all = gx_t
        else:
            u_all = gx_t + jnp.dot(whs_ref[...], h,
                                   preferred_element_type=jnp.float32)

        # 3x3 'same' conv = per-tap lane roll (XLU) + boundary mask (VPU): no MXU.
        acc = None
        for tap in range(n_taps):
            u_tap = u_all[tap * gdim:(tap + 1) * gdim, :]
            off = offsets[tap]
            if off == 0:
                contrib = u_tap
            else:
                contrib = pltpu.roll(u_tap, shift=(-off) % n, axis=1) * mask_bc[tap]
            acc = contrib if acc is None else acc + contrib
        gates = acc + bias                   # (4*hid, N)

        # Gate order (i, f, o, g); one merged sigmoid over the first 3*hid rows.
        sg = jax.nn.sigmoid(gates[:3 * hid, :])
        i_g = sg[0 * hid:1 * hid, :]
        f_g = sg[1 * hid:2 * hid, :]
        o_g = sg[2 * hid:3 * hid, :]
        g_g = jnp.tanh(gates[3 * hid:4 * hid, :])
        c = i_g * g_g if c is None else f_g * c + i_g * g_g
        h = o_g * jnp.tanh(c)

    # ------------------------- dense tail (one shot) -------------------------
    # linear1 + ReLU: NCHW flatten folded into batch-block-diagonal w1 slabs, so
    # the result is a lane-dense (1, B*cls) row — no transpose/concat in-kernel.
    a1 = b1_ref[...]
    for ch in range(hid):
        a1 = a1 + jnp.dot(h[ch:ch + 1, :], w1_ref[ch],
                          preferred_element_type=jnp.float32)
    a1 = jnp.maximum(a1, 0.0)
    a2 = jnp.maximum(jnp.dot(x2_ref[...], w2_ref[...],
                             preferred_element_type=jnp.float32) + b2_ref[...], 0.0)
    # concat([a1, a2]) @ Wm0 as a split matmul (no in-kernel concat).
    y = (jnp.dot(a1, wa_ref[...], preferred_element_type=jnp.float32)
         + jnp.dot(a2, wb_ref[...], preferred_element_type=jnp.float32)
         + bm0_ref[...])
    y = jnp.maximum(y, 0.0)
    for li in range(n_mlp - 1):
        w_r, b_r = tail_refs[2 * li], tail_refs[2 * li + 1]
        y = jnp.maximum(jnp.dot(y, w_r[...], preferred_element_type=jnp.float32)
                        + b_r[...], 0.0)
    out_ref[...] = y


# --------------------------------------------------------------------------
# Wrapper: layout prep (input transpose, stacked/tap weights, block-diag tail
# weights) + one grid-less pallas_call with everything VMEM-resident.
# --------------------------------------------------------------------------
def predic_model_3_forward(params, x1, x2):
    batch, seq_len, cin, height, width = x1.shape
    var_num = x2.shape[1]
    hid = params['wh'].shape[-1]
    hw = height * width
    n = batch * hw
    k = int(round(math.sqrt(params['wx'].shape[0])))
    n_taps = k * k
    cls = params['w1'].shape[-1]
    n_mlp = 1 + len(params['mlp_tail'])
    out_dim = params['mlp_tail'][-1][0].shape[-1]
    assert n % 128 == 0, "lane-dense layout / lane rolls expect B*H*W % 128 == 0"

    # (B, T, C, H, W) -> (C, T*B*H*W): channels on sublanes, time+pixels lane-dense.
    x_all = jnp.transpose(x1, (2, 1, 0, 3, 4)).reshape(cin, seq_len * n)
    x2_flat = x2.reshape(1, batch * var_num)

    wxs = params['wx'].reshape(n_taps * 4 * hid, cin)   # all taps stacked: 1 matmul
    whs = params['wh'].reshape(n_taps * 4 * hid, hid)
    masks = jnp.asarray(_build_tap_masks(batch, height, width, k))

    # Fold the batch dimension into block-diagonal tail weights so the whole dense
    # tail runs on lane-dense (1, B*feat) rows without any in-kernel concat/reshape.
    eye_b = jnp.eye(batch, dtype=jnp.float32)

    def bdiag(w):
        fin, fout = w.shape
        return jnp.einsum('ab,io->aibo', eye_b, w).reshape(batch * fin, batch * fout)

    def btile(b):
        return jnp.tile(b.reshape(1, -1), (1, batch))

    w1_bd = jnp.einsum('ab,cpo->capbo', eye_b, params['w1']
                       ).reshape(hid, n, batch * cls)

    inputs = [x_all, x2_flat, wxs, whs, params['conv_b'], masks,
              w1_bd, btile(params['b1']),
              bdiag(params['w2']), btile(params['b2']),
              bdiag(params['wm0a']), bdiag(params['wm0b']), btile(params['bm0'])]
    for w, b in params['mlp_tail']:
        inputs.extend([bdiag(w), btile(b)])

    kernel = functools.partial(_fused_kernel, seq_len=seq_len, batch=batch, hw=hw,
                               hid=hid, n_taps=n_taps, k=k, width=width,
                               n_mlp=n_mlp)
    vmem = pl.BlockSpec(memory_space=pltpu.MemorySpace.VMEM)
    y = pl.pallas_call(
        kernel,
        out_shape=jax.ShapeDtypeStruct((1, batch * out_dim), jnp.float32),
        in_specs=[vmem] * len(inputs),
        out_specs=vmem,
    )(*inputs)
    return y.reshape(batch, out_dim)


# --------------------------------------------------------------------------
# Parameter construction (PyTorch-default-style init, stored in kernel layout).
# --------------------------------------------------------------------------
def _init_linear(key, fan_in, fan_out):
    kw, kb = jax.random.split(key)
    bound = 1.0 / math.sqrt(fan_in)
    w = jax.random.uniform(kw, (fan_in, fan_out), jnp.float32, -bound, bound)
    b = jax.random.uniform(kb, (fan_out,), jnp.float32, -bound, bound)
    return w, b


def init_params(key, kernel_size, input_dim, hidden_dim, input_height, input_width,
                linear_dim, output_dim, convlstm_linear_size, var_num=5):
    n_mlp = len(linear_dim) + 1
    keys = jax.random.split(key, 4 + n_mlp)

    # ConvLSTM cell conv: in = input_dim + hidden_dim, out = 4 * hidden_dim.
    cin_total = input_dim + hidden_dim
    fan_in = cin_total * kernel_size * kernel_size
    bound = 1.0 / math.sqrt(fan_in)
    kw, kb = jax.random.split(keys[0])
    conv_w = jax.random.uniform(
        kw, (4 * hidden_dim, cin_total, kernel_size, kernel_size),
        jnp.float32, -bound, bound)
    conv_b = jax.random.uniform(kb, (4 * hidden_dim,), jnp.float32, -bound, bound)
    # Per-tap weight slabs: (k*k, 4*hid, cin_total) split into x-part / h-part.
    w_taps = jnp.transpose(conv_w, (2, 3, 0, 1)).reshape(
        kernel_size * kernel_size, 4 * hidden_dim, cin_total)
    wx = w_taps[:, :, :input_dim]
    wh = w_taps[:, :, input_dim:]

    hw = input_height * input_width
    w1, b1 = _init_linear(keys[1], hidden_dim * hw, convlstm_linear_size)
    w1 = w1.reshape(hidden_dim, hw, convlstm_linear_size)   # row idx = c*HW + p
    w2, b2 = _init_linear(keys[2], var_num, 10)

    dims = [10 + convlstm_linear_size] + list(linear_dim) + [output_dim]
    wm0, bm0 = _init_linear(keys[3], dims[0], dims[1])
    wm0a = wm0[:convlstm_linear_size]        # rows fed by linear1's features
    wm0b = wm0[convlstm_linear_size:]        # rows fed by linear2's features
    mlp_tail = []
    for i in range(1, len(dims) - 1):
        w, b = _init_linear(keys[3 + i], dims[i], dims[i + 1])
        mlp_tail.append((w, b.reshape(1, -1)))

    return dict(wx=wx, wh=wh, conv_b=conv_b.reshape(-1, 1),
                w1=w1, b1=b1.reshape(1, -1), w2=w2, b2=b2.reshape(1, -1),
                wm0a=wm0a, wm0b=wm0b, bm0=bm0.reshape(1, -1),
                mlp_tail=mlp_tail)


# --------------------------------------------------------------------------
# Plain-JAX reference (no Pallas) used as a numerical cross-check.
# --------------------------------------------------------------------------
def _reference_forward(params, x1, x2):
    batch, seq_len, cin, height, width = x1.shape
    hid = params['wh'].shape[-1]
    k = int(round(math.sqrt(params['wx'].shape[0])))
    w_taps = jnp.concatenate([params['wx'], params['wh']], axis=-1)
    conv_w = jnp.transpose(w_taps.reshape(k, k, 4 * hid, cin + hid), (2, 3, 0, 1))
    conv_b = params['conv_b'][:, 0]
    h = jnp.zeros((batch, hid, height, width), jnp.float32)
    c = jnp.zeros((batch, hid, height, width), jnp.float32)
    for t in range(seq_len):
        z = jnp.concatenate([x1[:, t], h], axis=1)
        gates = jax.lax.conv_general_dilated(
            z, conv_w, (1, 1), 'SAME',
            dimension_numbers=('NCHW', 'OIHW', 'NCHW'),
            precision=jax.lax.Precision.HIGHEST) + conv_b[None, :, None, None]
        i = jax.nn.sigmoid(gates[:, 0 * hid:1 * hid])
        f = jax.nn.sigmoid(gates[:, 1 * hid:2 * hid])
        o = jax.nn.sigmoid(gates[:, 2 * hid:3 * hid])
        g = jnp.tanh(gates[:, 3 * hid:4 * hid])
        c = f * c + i * g
        h = o * jnp.tanh(c)
    x1f = h.reshape(batch, -1)                                     # NCHW flatten
    w1 = params['w1'].reshape(hid * height * width, -1)
    a1 = jax.nn.relu(x1f @ w1 + params['b1'])
    a2 = jax.nn.relu(x2 @ params['w2'] + params['b2'])
    y = jax.nn.relu(a1 @ params['wm0a'] + a2 @ params['wm0b'] + params['bm0'])
    for w, b in params['mlp_tail']:
        y = jax.nn.relu(y @ w + b)
    return y


if __name__ == "__main__":
    kernel_size = 3
    input_dim = 3
    hidden_dim = 4
    input_height = 8
    input_width = 8
    seq_len = 4
    linear_dim = [16, 8]
    output_dim = 2
    convlstm_linear_size = 32
    var_num = 5
    batch = 2

    key = jax.random.PRNGKey(0)
    kp, kx1, kx2 = jax.random.split(key, 3)
    params = init_params(kp, kernel_size, input_dim, hidden_dim, input_height,
                         input_width, linear_dim, output_dim,
                         convlstm_linear_size, var_num)
    x1 = jax.random.normal(
        kx1, (batch, seq_len, input_dim, input_height, input_width), jnp.float32)
    x2 = jax.random.normal(kx2, (batch, var_num), jnp.float32)

    out = jax.jit(predic_model_3_forward)(params, x1, x2)
    out = jax.block_until_ready(out)
    assert out.shape == (batch, output_dim)

    # Numerical cross-check against a plain-JAX (non-Pallas) reference.
    with jax.default_matmul_precision("float32"):
        ref = _reference_forward(params, x1, x2)
    np.testing.assert_allclose(np.asarray(out), np.asarray(ref),
                               rtol=2e-3, atol=1e-4)

    print("KERNEL_OK")
</pallas_src>

<mosaic_0001>
module attributes {stable_mosaic.version = 11 : i64} {
  func.func @_fused_kernel(%arg0: memref<3x512xf32, #tpu.memory_space<vmem>>, %arg1: memref<1x10xf32, #tpu.memory_space<vmem>>, %arg2: memref<144x3xf32, #tpu.memory_space<vmem>>, %arg3: memref<144x4xf32, #tpu.memory_space<vmem>>, %arg4: memref<16x1xf32, #tpu.memory_space<vmem>>, %arg5: memref<9x1x128xf32, #tpu.memory_space<vmem>>, %arg6: memref<4x128x64xf32, #tpu.memory_space<vmem>>, %arg7: memref<1x64xf32, #tpu.memory_space<vmem>>, %arg8: memref<10x20xf32, #tpu.memory_space<vmem>>, %arg9: memref<1x20xf32, #tpu.memory_space<vmem>>, %arg10: memref<64x32xf32, #tpu.memory_space<vmem>>, %arg11: memref<20x32xf32, #tpu.memory_space<vmem>>, %arg12: memref<1x32xf32, #tpu.memory_space<vmem>>, %arg13: memref<32x16xf32, #tpu.memory_space<vmem>>, %arg14: memref<1x16xf32, #tpu.memory_space<vmem>>, %arg15: memref<16x4xf32, #tpu.memory_space<vmem>>, %arg16: memref<1x4xf32, #tpu.memory_space<vmem>>, %arg17: memref<1x4xf32, #tpu.memory_space<vmem>>) attributes {dimension_semantics = [], scalar_prefetch = 0 : i64, scratch_operands = 0 : i64, tpu.core_type = #tpu.core_type<tc>} {
    %c0 = arith.constant 0 : index
    %c0_0 = arith.constant 0 : index
    %c0_1 = arith.constant 0 : index
    %0 = vector.load %arg5[%c0, %c0_0, %c0_1] : memref<9x1x128xf32, #tpu.memory_space<vmem>>, vector<1x1x128xf32>
    %1 = vector.shape_cast %0 : vector<1x1x128xf32> to vector<1x128xf32>
    %2 = vector.shape_cast %1 : vector<1x128xf32> to vector<1x128xf32>
    %3 = vector.broadcast %2 : vector<1x128xf32> to vector<16x128xf32>
    %c1 = arith.constant 1 : index
    %c0_2 = arith.constant 0 : index
    %c0_3 = arith.constant 0 : index
    %4 = vector.load %arg5[%c1, %c0_2, %c0_3] : memref<9x1x128xf32, #tpu.memory_space<vmem>>, vector<1x1x128xf32>
    %5 = vector.shape_cast %4 : vector<1x1x128xf32> to vector<1x128xf32>
    %6 = vector.shape_cast %5 : vector<1x128xf32> to vector<1x128xf32>
    %7 = vector.broadcast %6 : vector<1x128xf32> to vector<16x128xf32>
    %c2 = arith.constant 2 : index
    %c0_4 = arith.constant 0 : index
    %c0_5 = arith.constant 0 : index
    %8 = vector.load %arg5[%c2, %c0_4, %c0_5] : memref<9x1x128xf32, #tpu.memory_space<vmem>>, vector<1x1x128xf32>
    %9 = vector.shape_cast %8 : vector<1x1x128xf32> to vector<1x128xf32>
    %10 = vector.shape_cast %9 : vector<1x128xf32> to vector<1x128xf32>
    %11 = vector.broadcast %10 : vector<1x128xf32> to vector<16x128xf32>
    %c3 = arith.constant 3 : index
    %c0_6 = arith.constant 0 : index
    %c0_7 = arith.constant 0 : index
    %12 = vector.load %arg5[%c3, %c0_6, %c0_7] : memref<9x1x128xf32, #tpu.memory_space<vmem>>, vector<1x1x128xf32>
    %13 = vector.shape_cast %12 : vector<1x1x128xf32> to vector<1x128xf32>
    %14 = vector.shape_cast %13 : vector<1x128xf32> to vector<1x128xf32>
    %15 = vector.broadcast %14 : vector<1x128xf32> to vector<16x128xf32>
    %c5 = arith.constant 5 : index
    %c0_8 = arith.constant 0 : index
    %c0_9 = arith.constant 0 : index
    %16 = vector.load %arg5[%c5, %c0_8, %c0_9] : memref<9x1x128xf32, #tpu.memory_space<vmem>>, vector<1x1x128xf32>
    %17 = vector.shape_cast %16 : vector<1x1x128xf32> to vector<1x128xf32>
    %18 = vector.shape_cast %17 : vector<1x128xf32> to vector<1x128xf32>
    %19 = vector.broadcast %18 : vector<1x128xf32> to vector<16x128xf32>
    %c6 = arith.constant 6 : index
    %c0_10 = arith.constant 0 : index
    %c0_11 = arith.constant 0 : index
    %20 = vector.load %arg5[%c6, %c0_10, %c0_11] : memref<9x1x128xf32, #tpu.memory_space<vmem>>, vector<1x1x128xf32>
    %21 = vector.shape_cast %20 : vector<1x1x128xf32> to vector<1x128xf32>
    %22 = vector.shape_cast %21 : vector<1x128xf32> to vector<1x128xf32>
    %23 = vector.broadcast %22 : vector<1x128xf32> to vector<16x128xf32>
    %c7 = arith.constant 7 : index
    %c0_12 = arith.constant 0 : index
    %c0_13 = arith.constant 0 : index
    %24 = vector.load %arg5[%c7, %c0_12, %c0_13] : memref<9x1x128xf32, #tpu.memory_space<vmem>>, vector<1x1x128xf32>
    %25 = vector.shape_cast %24 : vector<1x1x128xf32> to vector<1x128xf32>
    %26 = vector.shape_cast %25 : vector<1x128xf32> to vector<1x128xf32>
    %27 = vector.broadcast %26 : vector<1x128xf32> to vector<16x128xf32>
    %c8 = arith.constant 8 : index
    %c0_14 = arith.constant 0 : index
    %c0_15 = arith.constant 0 : index
    %28 = vector.load %arg5[%c8, %c0_14, %c0_15] : memref<9x1x128xf32, #tpu.memory_space<vmem>>, vector<1x1x128xf32>
    %29 = vector.shape_cast %28 : vector<1x1x128xf32> to vector<1x128xf32>
    %30 = vector.shape_cast %29 : vector<1x128xf32> to vector<1x128xf32>
    %31 = vector.broadcast %30 : vector<1x128xf32> to vector<16x128xf32>
    %c0_16 = arith.constant 0 : index
    %c0_17 = arith.constant 0 : index
    %32 = vector.load %arg2[%c0_16, %c0_17] : memref<144x3xf32, #tpu.memory_space<vmem>>, vector<144x3xf32>
    %c0_18 = arith.constant 0 : index
    %c0_19 = arith.constant 0 : index
    %33 = vector.load %arg0[%c0_18, %c0_19] : memref<3x512xf32, #tpu.memory_space<vmem>>, vector<3x512xf32>
    %cst = arith.constant dense<0.000000e+00> : vector<144x512xf32>
    %34 = tpu.matmul %32, %33, %cst {dimension_numbers = #tpu.dot_dimension_numbers<[1], [0], [0], [1], [0, 0, 1, 1], [], []>} : vector<144x3xf32>, vector<3x512xf32>, vector<144x512xf32> -> vector<144x512xf32>
    %c0_20 = arith.constant 0 : index
    %c0_21 = arith.constant 0 : index
    %35 = vector.load %arg4[%c0_20, %c0_21] : memref<16x1xf32, #tpu.memory_space<vmem>>, vector<16x1xf32>
    %36 = vector.extract_strided_slice %34 {offsets = [0, 0], sizes = [144, 128], strides = [1, 1]} : vector<144x512xf32> to vector<144x128xf32>
    %37 = vector.extract_strided_slice %36 {offsets = [0, 0], sizes = [16, 128], strides = [1, 1]} : vector<144x128xf32> to vector<16x128xf32>
    %c9_i32 = arith.constant 9 : i32
    %38 = tpu.dynamic_rotate %37 by %c9_i32 dim 1 : vector<16x128xf32>, i32 -> vector<16x128xf32>
    %39 = arith.mulf %38, %3 : vector<16x128xf32>
    %40 = vector.extract_strided_slice %36 {offsets = [16, 0], sizes = [16, 128], strides = [1, 1]} : vector<144x128xf32> to vector<16x128xf32>
    %c8_i32 = arith.constant 8 : i32
    %41 = tpu.dynamic_rotate %40 by %c8_i32 dim 1 : vector<16x128xf32>, i32 -> vector<16x128xf32>
    %42 = arith.mulf %41, %7 : vector<16x128xf32>
    %43 = arith.addf %39, %42 : vector<16x128xf32>
    %44 = vector.extract_strided_slice %36 {offsets = [32, 0], sizes = [16, 128], strides = [1, 1]} : vector<144x128xf32> to vector<16x128xf32>
    %c7_i32 = arith.constant 7 : i32
    %45 = tpu.dynamic_rotate %44 by %c7_i32 dim 1 : vector<16x128xf32>, i32 -> vector<16x128xf32>
    %46 = arith.mulf %45, %11 : vector<16x128xf32>
    %47 = arith.addf %43, %46 : vector<16x128xf32>
    %48 = vector.extract_strided_slice %36 {offsets = [48, 0], sizes = [16, 128], strides = [1, 1]} : vector<144x128xf32> to vector<16x128xf32>
    %c1_i32 = arith.constant 1 : i32
    %49 = tpu.dynamic_rotate %48 by %c1_i32 dim 1 : vector<16x128xf32>, i32 -> vector<16x128xf32>
    %50 = arith.mulf %49, %15 : vector<16x128xf32>
    %51 = arith.addf %47, %50 : vector<16x128xf32>
    %52 = vector.extract_strided_slice %36 {offsets = [64, 0], sizes = [16, 128], strides = [1, 1]} : vector<144x128xf32> to vector<16x128xf32>
    %53 = arith.addf %51, %52 : vector<16x128xf32>
    %54 = vector.extract_strided_slice %36 {offsets = [80, 0], sizes = [16, 128], strides = [1, 1]} : vector<144x128xf32> to vector<16x128xf32>
    %c127_i32 = arith.constant 127 : i32
    %55 = tpu.dynamic_rotate %54 by %c127_i32 dim 1 : vector<16x128xf32>, i32 -> vector<16x128xf32>
    %56 = arith.mulf %55, %19 : vector<16x128xf32>
    %57 = arith.addf %53, %56 : vector<16x128xf32>
    %58 = vector.extract_strided_slice %36 {offsets = [96, 0], sizes = [16, 128], strides = [1, 1]} : vector<144x128xf32> to vector<16x128xf32>
    %c121_i32 = arith.constant 121 : i32
    %59 = tpu.dynamic_rotate %58 by %c121_i32 dim 1 : vector<16x128xf32>, i32 -> vector<16x128xf32>
    %60 = arith.mulf %59, %23 : vector<16x128xf32>
    %61 = arith.addf %57, %60 : vector<16x128xf32>
    %62 = vector.extract_strided_slice %36 {offsets = [112, 0], sizes = [16, 128], strides = [1, 1]} : vector<144x128xf32> to vector<16x128xf32>
    %c120_i32 = arith.constant 120 : i32
    %63 = tpu.dynamic_rotate %62 by %c120_i32 dim 1 : vector<16x128xf32>, i32 -> vector<16x128xf32>
    %64 = arith.mulf %63, %27 : vector<16x128xf32>
    %65 = arith.addf %61, %64 : vector<16x128xf32>
    %66 = vector.extract_strided_slice %36 {offsets = [128, 0], sizes = [16, 128], strides = [1, 1]} : vector<144x128xf32> to vector<16x128xf32>
    %c119_i32 = arith.constant 119 : i32
    %67 = tpu.dynamic_rotate %66 by %c119_i32 dim 1 : vector<16x128xf32>, i32 -> vector<16x128xf32>
    %68 = arith.mulf %67, %31 : vector<16x128xf32>
    %69 = arith.addf %65, %68 : vector<16x128xf32>
    %70 = vector.broadcast %35 : vector<16x1xf32> to vector<16x128xf32>
    %71 = arith.addf %69, %70 : vector<16x128xf32>
    %72 = vector.extract_strided_slice %71 {offsets = [0, 0], sizes = [12, 128], strides = [1, 1]} : vector<16x128xf32> to vector<12x128xf32>
    %73 = arith.negf %72 : vector<12x128xf32>
    %74 = math.exp %73 : vector<12x128xf32>
    %cst_22 = arith.constant 1.000000e+00 : f32
    %75 = vector.broadcast %cst_22 : f32 to vector<12x128xf32>
    %76 = arith.addf %75, %74 : vector<12x128xf32>
    %77 = arith.divf %75, %76 : vector<12x128xf32>
    %78 = vector.extract_strided_slice %77 {offsets = [0, 0], sizes = [4, 128], strides = [1, 1]} : vector<12x128xf32> to vector<4x128xf32>
    %79 = vector.extract_strided_slice %77 {offsets = [8, 0], sizes = [4, 128], strides = [1, 1]} : vector<12x128xf32> to vector<4x128xf32>
    %80 = vector.extract_strided_slice %71 {offsets = [12, 0], sizes = [4, 128], strides = [1, 1]} : vector<16x128xf32> to vector<4x128xf32>
    %81 = math.tanh %80 : vector<4x128xf32>
    %82 = arith.mulf %78, %81 : vector<4x128xf32>
    %83 = math.tanh %82 : vector<4x128xf32>
    %84 = arith.mulf %79, %83 : vector<4x128xf32>
    %85 = vector.extract_strided_slice %34 {offsets = [0, 128], sizes = [144, 128], strides = [1, 1]} : vector<144x512xf32> to vector<144x128xf32>
    %c0_23 = arith.constant 0 : index
    %c0_24 = arith.constant 0 : index
    %86 = vector.load %arg3[%c0_23, %c0_24] : memref<144x4xf32, #tpu.memory_space<vmem>>, vector<144x4xf32>
    %cst_25 = arith.constant dense<0.000000e+00> : vector<144x128xf32>
    %87 = tpu.matmul %86, %84, %cst_25 {dimension_numbers = #tpu.dot_dimension_numbers<[1], [0], [0], [1], [0, 0, 1, 1], [], []>} : vector<144x4xf32>, vector<4x128xf32>, vector<144x128xf32> -> vector<144x128xf32>
    %88 = arith.addf %85, %87 : vector<144x128xf32>
    %89 = vector.extract_strided_slice %88 {offsets = [0, 0], sizes = [16, 128], strides = [1, 1]} : vector<144x128xf32> to vector<16x128xf32>
    %c9_i32_26 = arith.constant 9 : i32
    %90 = tpu.dynamic_rotate %89 by %c9_i32_26 dim 1 : vector<16x128xf32>, i32 -> vector<16x128xf32>
    %91 = arith.mulf %90, %3 : vector<16x128xf32>
    %92 = vector.extract_strided_slice %88 {offsets = [16, 0], sizes = [16, 128], strides = [1, 1]} : vector<144x128xf32> to vector<16x128xf32>
    %c8_i32_27 = arith.constant 8 : i32
    %93 = tpu.dynamic_rotate %92 by %c8_i32_27 dim 1 : vector<16x128xf32>, i32 -> vector<16x128xf32>
    %94 = arith.mulf %93, %7 : vector<16x128xf32>
    %95 = arith.addf %91, %94 : vector<16x128xf32>
    %96 = vector.extract_strided_slice %88 {offsets = [32, 0], sizes = [16, 128], strides = [1, 1]} : vector<144x128xf32> to vector<16x128xf32>
    %c7_i32_28 = arith.constant 7 : i32
    %97 = tpu.dynamic_rotate %96 by %c7_i32_28 dim 1 : vector<16x128xf32>, i32 -> vector<16x128xf32>
    %98 = arith.mulf %97, %11 : vector<16x128xf32>
    %99 = arith.addf %95, %98 : vector<16x128xf32>
    %100 = vector.extract_strided_slice %88 {offsets = [48, 0], sizes = [16, 128], strides = [1, 1]} : vector<144x128xf32> to vector<16x128xf32>
    %c1_i32_29 = arith.constant 1 : i32
    %101 = tpu.dynamic_rotate %100 by %c1_i32_29 dim 1 : vector<16x128xf32>, i32 -> vector<16x128xf32>
    %102 = arith.mulf %101, %15 : vector<16x128xf32>
    %103 = arith.addf %99, %102 : vector<16x128xf32>
    %104 = vector.extract_strided_slice %88 {offsets = [64, 0], sizes = [16, 128], strides = [1, 1]} : vector<144x128xf32> to vector<16x128xf32>
    %105 = arith.addf %103, %104 : vector<16x128xf32>
    %106 = vector.extract_strided_slice %88 {offsets = [80, 0], sizes = [16, 128], strides = [1, 1]} : vector<144x128xf32> to vector<16x128xf32>
    %c127_i32_30 = arith.constant 127 : i32
    %107 = tpu.dynamic_rotate %106 by %c127_i32_30 dim 1 : vector<16x128xf32>, i32 -> vector<16x128xf32>
    %108 = arith.mulf %107, %19 : vector<16x128xf32>
    %109 = arith.addf %105, %108 : vector<16x128xf32>
    %110 = vector.extract_strided_slice %88 {offsets = [96, 0], sizes = [16, 128], strides = [1, 1]} : vector<144x128xf32> to vector<16x128xf32>
    %c121_i32_31 = arith.constant 121 : i32
    %111 = tpu.dynamic_rotate %110 by %c121_i32_31 dim 1 : vector<16x128xf32>, i32 -> vector<16x128xf32>
    %112 = arith.mulf %111, %23 : vector<16x128xf32>
    %113 = arith.addf %109, %112 : vector<16x128xf32>
    %114 = vector.extract_strided_slice %88 {offsets = [112, 0], sizes = [16, 128], strides = [1, 1]} : vector<144x128xf32> to vector<16x128xf32>
    %c120_i32_32 = arith.constant 120 : i32
    %115 = tpu.dynamic_rotate %114 by %c120_i32_32 dim 1 : vector<16x128xf32>, i32 -> vector<16x128xf32>
    %116 = arith.mulf %115, %27 : vector<16x128xf32>
    %117 = arith.addf %113, %116 : vector<16x128xf32>
    %118 = vector.extract_strided_slice %88 {offsets = [128, 0], sizes = [16, 128], strides = [1, 1]} : vector<144x128xf32> to vector<16x128xf32>
    %c119_i32_33 = arith.constant 119 : i32
    %119 = tpu.dynamic_rotate %118 by %c119_i32_33 dim 1 : vector<16x128xf32>, i32 -> vector<16x128xf32>
    %120 = arith.mulf %119, %31 : vector<16x128xf32>
    %121 = arith.addf %117, %120 : vector<16x128xf32>
    %122 = vector.broadcast %35 : vector<16x1xf32> to vector<16x128xf32>
    %123 = arith.addf %121, %122 : vector<16x128xf32>
    %124 = vector.extract_strided_slice %123 {offsets = [0, 0], sizes = [12, 128], strides = [1, 1]} : vector<16x128xf32> to vector<12x128xf32>
    %125 = arith.negf %124 : vector<12x128xf32>
    %126 = math.exp %125 : vector<12x128xf32>
    %cst_34 = arith.constant 1.000000e+00 : f32
    %127 = vector.broadcast %cst_34 : f32 to vector<12x128xf32>
    %128 = arith.addf %127, %126 : vector<12x128xf32>
    %129 = arith.divf %127, %128 : vector<12x128xf32>
    %130 = vector.extract_strided_slice %129 {offsets = [0, 0], sizes = [4, 128], strides = [1, 1]} : vector<12x128xf32> to vector<4x128xf32>
    %131 = vector.extract_strided_slice %129 {offsets = [4, 0], sizes = [4, 128], strides = [1, 1]} : vector<12x128xf32> to vector<4x128xf32>
    %132 = vector.extract_strided_slice %129 {offsets = [8, 0], sizes = [4, 128], strides = [1, 1]} : vector<12x128xf32> to vector<4x128xf32>
    %133 = vector.extract_strided_slice %123 {offsets = [12, 0], sizes = [4, 128], strides = [1, 1]} : vector<16x128xf32> to vector<4x128xf32>
    %134 = math.tanh %133 : vector<4x128xf32>
    %135 = arith.mulf %131, %82 : vector<4x128xf32>
    %136 = arith.mulf %130, %134 : vector<4x128xf32>
    %137 = arith.addf %135, %136 : vector<4x128xf32>
    %138 = math.tanh %137 : vector<4x128xf32>
    %139 = arith.mulf %132, %138 : vector<4x128xf32>
    %140 = vector.extract_strided_slice %34 {offsets = [0, 256], sizes = [144, 128], strides = [1, 1]} : vector<144x512xf32> to vector<144x128xf32>
    %c0_35 = arith.constant 0 : index
    %c0_36 = arith.constant 0 : index
    %141 = vector.load %arg3[%c0_35, %c0_36] : memref<144x4xf32, #tpu.memory_space<vmem>>, vector<144x4xf32>
    %cst_37 = arith.constant dense<0.000000e+00> : vector<144x128xf32>
    %142 = tpu.matmul %141, %139, %cst_37 {dimension_numbers = #tpu.dot_dimension_numbers<[1], [0], [0], [1], [0, 0, 1, 1], [], []>} : vector<144x4xf32>, vector<4x128xf32>, vector<144x128xf32> -> vector<144x128xf32>
    %143 = arith.addf %140, %142 : vector<144x128xf32>
    %144 = vector.extract_strided_slice %143 {offsets = [0, 0], sizes = [16, 128], strides = [1, 1]} : vector<144x128xf32> to vector<16x128xf32>
    %c9_i32_38 = arith.constant 9 : i32
    %145 = tpu.dynamic_rotate %144 by %c9_i32_38 dim 1 : vector<16x128xf32>, i32 -> vector<16x128xf32>
    %146 = arith.mulf %145, %3 : vector<16x128xf32>
    %147 = vector.extract_strided_slice %143 {offsets = [16, 0], sizes = [16, 128], strides = [1, 1]} : vector<144x128xf32> to vector<16x128xf32>
    %c8_i32_39 = arith.constant 8 : i32
    %148 = tpu.dynamic_rotate %147 by %c8_i32_39 dim 1 : vector<16x128xf32>, i32 -> vector<16x128xf32>
    %149 = arith.mulf %148, %7 : vector<16x128xf32>
    %150 = arith.addf %146, %149 : vector<16x128xf32>
    %151 = vector.extract_strided_slice %143 {offsets = [32, 0], sizes = [16, 128], strides = [1, 1]} : vector<144x128xf32> to vector<16x128xf32>
    %c7_i32_40 = arith.constant 7 : i32
    %152 = tpu.dynamic_rotate %151 by %c7_i32_40 dim 1 : vector<16x128xf32>, i32 -> vector<16x128xf32>
    %153 = arith.mulf %152, %11 : vector<16x128xf32>
    %154 = arith.addf %150, %153 : vector<16x128xf32>
    %155 = vector.extract_strided_slice %143 {offsets = [48, 0], sizes = [16, 128], strides = [1, 1]} : vector<144x128xf32> to vector<16x128xf32>
    %c1_i32_41 = arith.constant 1 : i32
    %156 = tpu.dynamic_rotate %155 by %c1_i32_41 dim 1 : vector<16x128xf32>, i32 -> vector<16x128xf32>
    %157 = arith.mulf %156, %15 : vector<16x128xf32>
    %158 = arith.addf %154, %157 : vector<16x128xf32>
    %159 = vector.extract_strided_slice %143 {offsets = [64, 0], sizes = [16, 128], strides = [1, 1]} : vector<144x128xf32> to vector<16x128xf32>
    %160 = arith.addf %158, %159 : vector<16x128xf32>
    %161 = vector.extract_strided_slice %143 {offsets = [80, 0], sizes = [16, 128], strides = [1, 1]} : vector<144x128xf32> to vector<16x128xf32>
    %c127_i32_42 = arith.constant 127 : i32
    %162 = tpu.dynamic_rotate %161 by %c127_i32_42 dim 1 : vector<16x128xf32>, i32 -> vector<16x128xf32>
    %163 = arith.mulf %162, %19 : vector<16x128xf32>
    %164 = arith.addf %160, %163 : vector<16x128xf32>
    %165 = vector.extract_strided_slice %143 {offsets = [96, 0], sizes = [16, 128], strides = [1, 1]} : vector<144x128xf32> to vector<16x128xf32>
    %c121_i32_43 = arith.constant 121 : i32
    %166 = tpu.dynamic_rotate %165 by %c121_i32_43 dim 1 : vector<16x128xf32>, i32 -> vector<16x128xf32>
    %167 = arith.mulf %166, %23 : vector<16x128xf32>
    %168 = arith.addf %164, %167 : vector<16x128xf32>
    %169 = vector.extract_strided_slice %143 {offsets = [112, 0], sizes = [16, 128], strides = [1, 1]} : vector<144x128xf32> to vector<16x128xf32>
    %c120_i32_44 = arith.constant 120 : i32
    %170 = tpu.dynamic_rotate %169 by %c120_i32_44 dim 1 : vector<16x128xf32>, i32 -> vector<16x128xf32>
    %171 = arith.mulf %170, %27 : vector<16x128xf32>
    %172 = arith.addf %168, %171 : vector<16x128xf32>
    %173 = vector.extract_strided_slice %143 {offsets = [128, 0], sizes = [16, 128], strides = [1, 1]} : vector<144x128xf32> to vector<16x128xf32>
    %c119_i32_45 = arith.constant 119 : i32
    %174 = tpu.dynamic_rotate %173 by %c119_i32_45 dim 1 : vector<16x128xf32>, i32 -> vector<16x128xf32>
    %175 = arith.mulf %174, %31 : vector<16x128xf32>
    %176 = arith.addf %172, %175 : vector<16x128xf32>
    %177 = vector.broadcast %35 : vector<16x1xf32> to vector<16x128xf32>
    %178 = arith.addf %176, %177 : vector<16x128xf32>
    %179 = vector.extract_strided_slice %178 {offsets = [0, 0], sizes = [12, 128], strides = [1, 1]} : vector<16x128xf32> to vector<12x128xf32>
    %180 = arith.negf %179 : vector<12x128xf32>
    %181 = math.exp %180 : vector<12x128xf32>
    %cst_46 = arith.constant 1.000000e+00 : f32
    %182 = vector.broadcast %cst_46 : f32 to vector<12x128xf32>
    %183 = arith.addf %182, %181 : vector<12x128xf32>
    %184 = arith.divf %182, %183 : vector<12x128xf32>
    %185 = vector.extract_strided_slice %184 {offsets = [0, 0], sizes = [4, 128], strides = [1, 1]} : vector<12x128xf32> to vector<4x128xf32>
    %186 = vector.extract_strided_slice %184 {offsets = [4, 0], sizes = [4, 128], strides = [1, 1]} : vector<12x128xf32> to vector<4x128xf32>
    %187 = vector.extract_strided_slice %184 {offsets = [8, 0], sizes = [4, 128], strides = [1, 1]} : vector<12x128xf32> to vector<4x128xf32>
    %188 = vector.extract_strided_slice %178 {offsets = [12, 0], sizes = [4, 128], strides = [1, 1]} : vector<16x128xf32> to vector<4x128xf32>
    %189 = math.tanh %188 : vector<4x128xf32>
    %190 = arith.mulf %186, %137 : vector<4x128xf32>
    %191 = arith.mulf %185, %189 : vector<4x128xf32>
    %192 = arith.addf %190, %191 : vector<4x128xf32>
    %193 = math.tanh %192 : vector<4x128xf32>
    %194 = arith.mulf %187, %193 : vector<4x128xf32>
    %195 = vector.extract_strided_slice %34 {offsets = [0, 384], sizes = [144, 128], strides = [1, 1]} : vector<144x512xf32> to vector<144x128xf32>
    %c0_47 = arith.constant 0 : index
    %c0_48 = arith.constant 0 : index
    %196 = vector.load %arg3[%c0_47, %c0_48] : memref<144x4xf32, #tpu.memory_space<vmem>>, vector<144x4xf32>
    %cst_49 = arith.constant dense<0.000000e+00> : vector<144x128xf32>
    %197 = tpu.matmul %196, %194, %cst_49 {dimension_numbers = #tpu.dot_dimension_numbers<[1], [0], [0], [1], [0, 0, 1, 1], [], []>} : vector<144x4xf32>, vector<4x128xf32>, vector<144x128xf32> -> vector<144x128xf32>
    %198 = arith.addf %195, %197 : vector<144x128xf32>
    %199 = vector.extract_strided_slice %198 {offsets = [0, 0], sizes = [16, 128], strides = [1, 1]} : vector<144x128xf32> to vector<16x128xf32>
    %c9_i32_50 = arith.constant 9 : i32
    %200 = tpu.dynamic_rotate %199 by %c9_i32_50 dim 1 : vector<16x128xf32>, i32 -> vector<16x128xf32>
    %201 = arith.mulf %200, %3 : vector<16x128xf32>
    %202 = vector.extract_strided_slice %198 {offsets = [16, 0], sizes = [16, 128], strides = [1, 1]} : vector<144x128xf32> to vector<16x128xf32>
    %c8_i32_51 = arith.constant 8 : i32
    %203 = tpu.dynamic_rotate %202 by %c8_i32_51 dim 1 : vector<16x128xf32>, i32 -> vector<16x128xf32>
    %204 = arith.mulf %203, %7 : vector<16x128xf32>
    %205 = arith.addf %201, %204 : vector<16x128xf32>
    %206 = vector.extract_strided_slice %198 {offsets = [32, 0], sizes = [16, 128], strides = [1, 1]} : vector<144x128xf32> to vector<16x128xf32>
    %c7_i32_52 = arith.constant 7 : i32
    %207 = tpu.dynamic_rotate %206 by %c7_i32_52 dim 1 : vector<16x128xf32>, i32 -> vector<16x128xf32>
    %208 = arith.mulf %207, %11 : vector<16x128xf32>
    %209 = arith.addf %205, %208 : vector<16x128xf32>
    %210 = vector.extract_strided_slice %198 {offsets = [48, 0], sizes = [16, 128], strides = [1, 1]} : vector<144x128xf32> to vector<16x128xf32>
    %c1_i32_53 = arith.constant 1 : i32
    %211 = tpu.dynamic_rotate %210 by %c1_i32_53 dim 1 : vector<16x128xf32>, i32 -> vector<16x128xf32>
    %212 = arith.mulf %211, %15 : vector<16x128xf32>
    %213 = arith.addf %209, %212 : vector<16x128xf32>
    %214 = vector.extract_strided_slice %198 {offsets = [64, 0], sizes = [16, 128], strides = [1, 1]} : vector<144x128xf32> to vector<16x128xf32>
    %215 = arith.addf %213, %214 : vector<16x128xf32>
    %216 = vector.extract_strided_slice %198 {offsets = [80, 0], sizes = [16, 128], strides = [1, 1]} : vector<144x128xf32> to vector<16x128xf32>
    %c127_i32_54 = arith.constant 127 : i32
    %217 = tpu.dynamic_rotate %216 by %c127_i32_54 dim 1 : vector<16x128xf32>, i32 -> vector<16x128xf32>
    %218 = arith.mulf %217, %19 : vector<16x128xf32>
    %219 = arith.addf %215, %218 : vector<16x128xf32>
    %220 = vector.extract_strided_slice %198 {offsets = [96, 0], sizes = [16, 128], strides = [1, 1]} : vector<144x128xf32> to vector<16x128xf32>
    %c121_i32_55 = arith.constant 121 : i32
    %221 = tpu.dynamic_rotate %220 by %c121_i32_55 dim 1 : vector<16x128xf32>, i32 -> vector<16x128xf32>
    %222 = arith.mulf %221, %23 : vector<16x128xf32>
    %223 = arith.addf %219, %222 : vector<16x128xf32>
    %224 = vector.extract_strided_slice %198 {offsets = [112, 0], sizes = [16, 128], strides = [1, 1]} : vector<144x128xf32> to vector<16x128xf32>
    %c120_i32_56 = arith.constant 120 : i32
    %225 = tpu.dynamic_rotate %224 by %c120_i32_56 dim 1 : vector<16x128xf32>, i32 -> vector<16x128xf32>
    %226 = arith.mulf %225, %27 : vector<16x128xf32>
    %227 = arith.addf %223, %226 : vector<16x128xf32>
    %228 = vector.extract_strided_slice %198 {offsets = [128, 0], sizes = [16, 128], strides = [1, 1]} : vector<144x128xf32> to vector<16x128xf32>
    %c119_i32_57 = arith.constant 119 : i32
    %229 = tpu.dynamic_rotate %228 by %c119_i32_57 dim 1 : vector<16x128xf32>, i32 -> vector<16x128xf32>
    %230 = arith.mulf %229, %31 : vector<16x128xf32>
    %231 = arith.addf %227, %230 : vector<16x128xf32>
    %232 = vector.broadcast %35 : vector<16x1xf32> to vector<16x128xf32>
    %233 = arith.addf %231, %232 : vector<16x128xf32>
    %234 = vector.extract_strided_slice %233 {offsets = [0, 0], sizes = [12, 128], strides = [1, 1]} : vector<16x128xf32> to vector<12x128xf32>
    %235 = arith.negf %234 : vector<12x128xf32>
    %236 = math.exp %235 : vector<12x128xf32>
    %cst_58 = arith.constant 1.000000e+00 : f32
    %237 = vector.broadcast %cst_58 : f32 to vector<12x128xf32>
    %238 = arith.addf %237, %236 : vector<12x128xf32>
    %239 = arith.divf %237, %238 : vector<12x128xf32>
    %240 = vector.extract_strided_slice %239 {offsets = [0, 0], sizes = [4, 128], strides = [1, 1]} : vector<12x128xf32> to vector<4x128xf32>
    %241 = vector.extract_strided_slice %239 {offsets = [4, 0], sizes = [4, 128], strides = [1, 1]} : vector<12x128xf32> to vector<4x128xf32>
    %242 = vector.extract_strided_slice %239 {offsets = [8, 0], sizes = [4, 128], strides = [1, 1]} : vector<12x128xf32> to vector<4x128xf32>
    %243 = vector.extract_strided_slice %233 {offsets = [12, 0], sizes = [4, 128], strides = [1, 1]} : vector<16x128xf32> to vector<4x128xf32>
    %244 = math.tanh %243 : vector<4x128xf32>
    %245 = arith.mulf %241, %192 : vector<4x128xf32>
    %246 = arith.mulf %240, %244 : vector<4x128xf32>
    %247 = arith.addf %245, %246 : vector<4x128xf32>
    %248 = math.tanh %247 : vector<4x128xf32>
    %249 = arith.mulf %242, %248 : vector<4x128xf32>
    %c0_59 = arith.constant 0 : index
    %c0_60 = arith.constant 0 : index
    %250 = vector.load %arg7[%c0_59, %c0_60] : memref<1x64xf32, #tpu.memory_space<vmem>>, vector<1x64xf32>
    %251 = vector.extract_strided_slice %249 {offsets = [0, 0], sizes = [1, 128], strides = [1, 1]} : vector<4x128xf32> to vector<1x128xf32>
    %c0_61 = arith.constant 0 : index
    %c0_62 = arith.constant 0 : index
    %c0_63 = arith.constant 0 : index
    %252 = vector.load %arg6[%c0_61, %c0_62, %c0_63] : memref<4x128x64xf32, #tpu.memory_space<vmem>>, vector<1x128x64xf32>
    %253 = vector.shape_cast %252 : vector<1x128x64xf32> to vector<128x64xf32>
    %cst_64 = arith.constant dense<0.000000e+00> : vector<1x64xf32>
    %254 = tpu.matmul %251, %253, %cst_64 {dimension_numbers = #tpu.dot_dimension_numbers<[1], [0], [0], [1], [0, 0, 1, 1], [], []>} : vector<1x128xf32>, vector<128x64xf32>, vector<1x64xf32> -> vector<1x64xf32>
    %255 = arith.addf %250, %254 : vector<1x64xf32>
    %256 = vector.extract_strided_slice %249 {offsets = [1, 0], sizes = [1, 128], strides = [1, 1]} : vector<4x128xf32> to vector<1x128xf32>
    %c1_65 = arith.constant 1 : index
    %c0_66 = arith.constant 0 : index
    %c0_67 = arith.constant 0 : index
    %257 = vector.load %arg6[%c1_65, %c0_66, %c0_67] : memref<4x128x64xf32, #tpu.memory_space<vmem>>, vector<1x128x64xf32>
    %258 = vector.shape_cast %257 : vector<1x128x64xf32> to vector<128x64xf32>
    %cst_68 = arith.constant dense<0.000000e+00> : vector<1x64xf32>
    %259 = tpu.matmul %256, %258, %cst_68 {dimension_numbers = #tpu.dot_dimension_numbers<[1], [0], [0], [1], [0, 0, 1, 1], [], []>} : vector<1x128xf32>, vector<128x64xf32>, vector<1x64xf32> -> vector<1x64xf32>
    %260 = arith.addf %255, %259 : vector<1x64xf32>
    %261 = vector.extract_strided_slice %249 {offsets = [2, 0], sizes = [1, 128], strides = [1, 1]} : vector<4x128xf32> to vector<1x128xf32>
    %c2_69 = arith.constant 2 : index
    %c0_70 = arith.constant 0 : index
    %c0_71 = arith.constant 0 : index
    %262 = vector.load %arg6[%c2_69, %c0_70, %c0_71] : memref<4x128x64xf32, #tpu.memory_space<vmem>>, vector<1x128x64xf32>
    %263 = vector.shape_cast %262 : vector<1x128x64xf32> to vector<128x64xf32>
    %cst_72 = arith.constant dense<0.000000e+00> : vector<1x64xf32>
    %264 = tpu.matmul %261, %263, %cst_72 {dimension_numbers = #tpu.dot_dimension_numbers<[1], [0], [0], [1], [0, 0, 1, 1], [], []>} : vector<1x128xf32>, vector<128x64xf32>, vector<1x64xf32> -> vector<1x64xf32>
    %265 = arith.addf %260, %264 : vector<1x64xf32>
    %266 = vector.extract_strided_slice %249 {offsets = [3, 0], sizes = [1, 128], strides = [1, 1]} : vector<4x128xf32> to vector<1x128xf32>
    %c3_73 = arith.constant 3 : index
    %c0_74 = arith.constant 0 : index
    %c0_75 = arith.constant 0 : index
    %267 = vector.load %arg6[%c3_73, %c0_74, %c0_75] : memref<4x128x64xf32, #tpu.memory_space<vmem>>, vector<1x128x64xf32>
    %268 = vector.shape_cast %267 : vector<1x128x64xf32> to vector<128x64xf32>
    %cst_76 = arith.constant dense<0.000000e+00> : vector<1x64xf32>
    %269 = tpu.matmul %266, %268, %cst_76 {dimension_numbers = #tpu.dot_dimension_numbers<[1], [0], [0], [1], [0, 0, 1, 1], [], []>} : vector<1x128xf32>, vector<128x64xf32>, vector<1x64xf32> -> vector<1x64xf32>
    %270 = arith.addf %265, %269 : vector<1x64xf32>
    %cst_77 = arith.constant 0.000000e+00 : f32
    %271 = vector.broadcast %cst_77 : f32 to vector<1x64xf32>
    %272 = arith.maximumf %270, %271 : vector<1x64xf32>
    %c0_78 = arith.constant 0 : index
    %c0_79 = arith.constant 0 : index
    %273 = vector.load %arg1[%c0_78, %c0_79] : memref<1x10xf32, #tpu.memory_space<vmem>>, vector<1x10xf32>
    %c0_80 = arith.constant 0 : index
    %c0_81 = arith.constant 0 : index
    %274 = vector.load %arg8[%c0_80, %c0_81] : memref<10x20xf32, #tpu.memory_space<vmem>>, vector<10x20xf32>
    %cst_82 = arith.constant dense<0.000000e+00> : vector<1x20xf32>
    %275 = tpu.matmul %273, %274, %cst_82 {dimension_numbers = #tpu.dot_dimension_numbers<[1], [0], [0], [1], [0, 0, 1, 1], [], []>} : vector<1x10xf32>, vector<10x20xf32>, vector<1x20xf32> -> vector<1x20xf32>
    %c0_83 = arith.constant 0 : index
    %c0_84 = arith.constant 0 : index
    %276 = vector.load %arg9[%c0_83, %c0_84] : memref<1x20xf32, #tpu.memory_space<vmem>>, vector<1x20xf32>
    %277 = arith.addf %275, %276 : vector<1x20xf32>
    %cst_85 = arith.constant 0.000000e+00 : f32
    %278 = vector.broadcast %cst_85 : f32 to vector<1x20xf32>
    %279 = arith.maximumf %277, %278 : vector<1x20xf32>
    %c0_86 = arith.constant 0 : index
    %c0_87 = arith.constant 0 : index
    %280 = vector.load %arg10[%c0_86, %c0_87] : memref<64x32xf32, #tpu.memory_space<vmem>>, vector<64x32xf32>
    %cst_88 = arith.constant dense<0.000000e+00> : vector<1x32xf32>
    %281 = tpu.matmul %272, %280, %cst_88 {dimension_numbers = #tpu.dot_dimension_numbers<[1], [0], [0], [1], [0, 0, 1, 1], [], []>} : vector<1x64xf32>, vector<64x32xf32>, vector<1x32xf32> -> vector<1x32xf32>
    %c0_89 = arith.constant 0 : index
    %c0_90 = arith.constant 0 : index
    %282 = vector.load %arg11[%c0_89, %c0_90] : memref<20x32xf32, #tpu.memory_space<vmem>>, vector<20x32xf32>
    %cst_91 = arith.constant dense<0.000000e+00> : vector<1x32xf32>
    %283 = tpu.matmul %279, %282, %cst_91 {dimension_numbers = #tpu.dot_dimension_numbers<[1], [0], [0], [1], [0, 0, 1, 1], [], []>} : vector<1x20xf32>, vector<20x32xf32>, vector<1x32xf32> -> vector<1x32xf32>
    %284 = arith.addf %281, %283 : vector<1x32xf32>
    %c0_92 = arith.constant 0 : index
    %c0_93 = arith.constant 0 : index
    %285 = vector.load %arg12[%c0_92, %c0_93] : memref<1x32xf32, #tpu.memory_space<vmem>>, vector<1x32xf32>
    %286 = arith.addf %284, %285 : vector<1x32xf32>
    %cst_94 = arith.constant 0.000000e+00 : f32
    %287 = vector.broadcast %cst_94 : f32 to vector<1x32xf32>
    %288 = arith.maximumf %286, %287 : vector<1x32xf32>
    %c0_95 = arith.constant 0 : index
    %c0_96 = arith.constant 0 : index
    %289 = vector.load %arg13[%c0_95, %c0_96] : memref<32x16xf32, #tpu.memory_space<vmem>>, vector<32x16xf32>
    %cst_97 = arith.constant dense<0.000000e+00> : vector<1x16xf32>
    %290 = tpu.matmul %288, %289, %cst_97 {dimension_numbers = #tpu.dot_dimension_numbers<[1], [0], [0], [1], [0, 0, 1, 1], [], []>} : vector<1x32xf32>, vector<32x16xf32>, vector<1x16xf32> -> vector<1x16xf32>
    %c0_98 = arith.constant 0 : index
    %c0_99 = arith.constant 0 : index
    %291 = vector.load %arg14[%c0_98, %c0_99] : memref<1x16xf32, #tpu.memory_space<vmem>>, vector<1x16xf32>
    %292 = arith.addf %290, %291 : vector<1x16xf32>
    %cst_100 = arith.constant 0.000000e+00 : f32
    %293 = vector.broadcast %cst_100 : f32 to vector<1x16xf32>
    %294 = arith.maximumf %292, %293 : vector<1x16xf32>
    %c0_101 = arith.constant 0 : index
    %c0_102 = arith.constant 0 : index
    %295 = vector.load %arg15[%c0_101, %c0_102] : memref<16x4xf32, #tpu.memory_space<vmem>>, vector<16x4xf32>
    %cst_103 = arith.constant dense<0.000000e+00> : vector<1x4xf32>
    %296 = tpu.matmul %294, %295, %cst_103 {dimension_numbers = #tpu.dot_dimension_numbers<[1], [0], [0], [1], [0, 0, 1, 1], [], []>} : vector<1x16xf32>, vector<16x4xf32>, vector<1x4xf32> -> vector<1x4xf32>
    %c0_104 = arith.constant 0 : index
    %c0_105 = arith.constant 0 : index
    %297 = vector.load %arg16[%c0_104, %c0_105] : memref<1x4xf32, #tpu.memory_space<vmem>>, vector<1x4xf32>
    %298 = arith.addf %296, %297 : vector<1x4xf32>
    %cst_106 = arith.constant 0.000000e+00 : f32
    %299 = vector.broadcast %cst_106 : f32 to vector<1x4xf32>
    %300 = arith.maximumf %298, %299 : vector<1x4xf32>
    %c0_107 = arith.constant 0 : index
    %c0_108 = arith.constant 0 : index
    %301 = vector.load %arg17[%c0_107, %c0_108] : memref<1x4xf32, #tpu.memory_space<vmem>>, vector<1x4xf32>
    tpu.vector_store %arg17[%c0_107, %c0_108], %300 {strides = array<i32>} : memref<1x4xf32, #tpu.memory_space<vmem>>, vector<1x4xf32>,
    return
  }
}

</mosaic_0001>

<bundles_post_ra>
// kernel: predic_model_3_forward.1
= control target key start
LH: loop header
LB: loop body
LE: loop exit
PB: predicated region body
PF: predicated region fallthrough
CT: control target
= control target key end

     0   :  { %vm198_vm0 = vcmask 1042432   ;;  %v4244_v1 = vmov 0.0   ;;  %vm143_vm1 = vcmask 23552   ;;  %v2982_v21 = vmov 0   ;;  %s2983_s23 = smov 9   ;;  %s2984_s24 = smov 8   ;;  %s4222_s0 = inlined_call_operand.vmem [shape: f32[3,512], index: 0, kind: input, shape index: {}]   ;;  %s4223_s2 = inlined_call_operand.vmem [shape: f32[144,3], index: 2, kind: input, shape index: {}]   ;;  %s4224_s4 = inlined_call_operand.vmem [shape: f32[16,1], index: 4, kind: input, shape index: {}]   ;;  %s4225_s3 = inlined_call_operand.vmem [shape: f32[144,4], index: 3, kind: input, shape index: {}]   ;;  %s4226_s5 = inlined_call_operand.vmem [shape: f32[9,1,128], index: 5, kind: input, shape index: {}]   ;;  %s4227_s6 = inlined_call_operand.vmem [shape: f32[4,128,64], index: 6, kind: input, shape index: {}]   ;;  %s4228_s8 = inlined_call_operand.vmem [shape: f32[10,20], index: 8, kind: input, shape index: {}]   ;;  %s4229_s1 = inlined_call_operand.vmem [shape: f32[1,10], index: 1, kind: input, shape index: {}]   ;;  %s4230_s11 = inlined_call_operand.vmem [shape: f32[20,32], index: 11, kind: input, shape index: {}]   ;;  %s4231_s9 = inlined_call_operand.vmem [shape: f32[1,20], index: 9, kind: input, shape index: {}]   ;;  %s4232_s10 = inlined_call_operand.vmem [shape: f32[64,32], index: 10, kind: input, shape index: {}]   ;;  %s4233_s7 = inlined_call_operand.vmem [shape: f32[1,64], index: 7, kind: input, shape index: {}]   ;;  %s4234_s13 = inlined_call_operand.vmem [shape: f32[32,16], index: 13, kind: input, shape index: {}]   ;;  %s4235_s12 = inlined_call_operand.vmem [shape: f32[1,32], index: 12, kind: input, shape index: {}]   ;;  %s4236_s15 = inlined_call_operand.vmem [shape: f32[16,4], index: 15, kind: input, shape index: {}]   ;;  %s4237_s14 = inlined_call_operand.vmem [shape: f32[1,16], index: 14, kind: input, shape index: {}]   ;;  %s4238_s16 = inlined_call_operand.vmem [shape: f32[1,4], index: 16, kind: input, shape index: {}]   ;;  %s4239_s17 = inlined_call_operand.vmem [shape: f32[1,4], index: 17, kind: output, shape index: {}]  }
   0x1   :  { %4270 = sst [smem:[#allocation18_spill]] %s4222_s0  ;;  %271 = vmatprep.mubr.f32.mxu0 %v4244_v1  ;;  %444 = vmatprep.mubr.f32.mxu1 %v4244_v1  ;;  %s2986_s25 = smov 1   ;;  %v553_v36 = vld [vmem:[%s4224_s4] sm:$0xff]  ;;  %v554_v58 = vld [vmem:[%s4224_s4 + $0x8] sm:$0xff]  ;;  %vm668_vm2 = vcmask 31744   ;;  %vm723_vm3 = vcmask 1043456  }
   0x2   :  { %4271 = sst [smem:[#allocation19_spill]] %s4223_s2  ;;  %2921 = vset.pattern.permute.xlu1 %v2982_v21  ;;  %2922 = vset.pattern.permute.xlu0 %v2982_v21  ;;  %s2987_s0 = smov 127   ;;  %v3295_v59 = vld [vmem:[%s4225_s3] sm:$0xff]  ;;  %vm2991_vm4 = vmmov 0   ;;  %vm1902_vm5 = vcmask 1041408   ;;  %vm1898_vm6 = vcmask 80896  }
   0x3   :  { %s4272_s26 = sld [smem:[#allocation18_spill]]  ;;  %s2988_s30 = smov 121   ;;  %v3302_v63 = vld [vmem:[%s4226_s5 + $0x1] ss:$0 sm:$0xff]  ;;  %v3312_v21 = vld [vmem:[%s4226_s5 + $0x2] ss:$0 sm:$0xff] }
   0x4   :  { %s4273_s29 = sld [smem:[#allocation19_spill]]  ;;  %s2989_s18 = smov 120   ;;  %vm1988_vm7 = vcmask 162816   ;;  %vm2065_vm8 = vcmask 523264   ;;  %vm2147_vm9 = vcmask 261120   ;;  %vm2225_vm10 = vcmask 130048  }
   0x5   :  { %s4242_s19 = smov 119   ;;  %vm2300_vm11 = vcmask 24576  }
   0x9   :  { %v137_v0 = vld [vmem:[%s4272_s26] sm:$0x77] }
   0xa   :  { %v141_v2 = vcombine.high %v137_v0, %v137_v0  ;;  %v3090_v3 = vld [vmem:[%s4273_s29] sm:$0xff]  ;;  %v3100_v4 = vld [vmem:[%s4273_s29 + $0x8] sm:$0xff]  ;;  %v3108_v5 = vld [vmem:[%s4273_s29 + $0x10] sm:$0xff] }
   0xb   :  { %v3116_v6 = vld [vmem:[%s4273_s29 + $0x18] sm:$0xff]  ;;  %v3124_v7 = vld [vmem:[%s4273_s29 + $0x20] sm:$0xff]  ;;  %v3132_v8 = vld [vmem:[%s4273_s29 + $0x28] sm:$0xff] }
   0xc   :  { %2321 = vmatprep.subr.msk.mxu0 %vm198_vm0, %v141_v2  ;;  %v3140_v9 = vld [vmem:[%s4273_s29 + $0x30] sm:$0xff]  ;;  %v3148_v10 = vld [vmem:[%s4273_s29 + $0x38] sm:$0xff]  ;;  %v3156_v11 = vld [vmem:[%s4273_s29 + $0x40] sm:$0xff] }
   0xd   :  { %2322 = vmatpush1.msk.msra.mxu0 %vm198_vm0, %v137_v0  ;;  %v3164_v12 = vld [vmem:[%s4273_s29 + $0x48] sm:$0xff]  ;;  %v3172_v13 = vld [vmem:[%s4273_s29 + $0x50] sm:$0xff]  ;;  %v3180_v14 = vld [vmem:[%s4273_s29 + $0x58] sm:$0xff] }
   0xe   :  { %2323 = vmatmul.mubr.msk.f32.vlgmr.msra.gmra.mxu0 %vm143_vm1, %v3090_v3  ;;  %v3188_v15 = vld [vmem:[%s4273_s29 + $0x60] sm:$0xff]  ;;  %v3196_v16 = vld [vmem:[%s4273_s29 + $0x68] sm:$0xff]  ;;  %v3204_v17 = vld [vmem:[%s4273_s29 + $0x70] sm:$0xff] }
   0xf   :  { %277 = vmatprep.mubr.f32.mxu0 %v4244_v1  ;;  %v3212_v18 = vld [vmem:[%s4273_s29 + $0x78] sm:$0xff]  ;;  %v3220_v19 = vld [vmem:[%s4273_s29 + $0x80] sm:$0xff]  ;;  %v3228_v20 = vld [vmem:[%s4273_s29 + $0x88] sm:$0xff]  ;;  %s2985_s29 = smov 7  }
  0x10   :  { %v3307_v2 = vld [vmem:[%s4226_s5] ss:$0 sm:$0xff] }
  0x12   :  { %2324 = vmatmul.mubr.msk.f32.gmra.mxu0 %vm143_vm1, %v3100_v4 }
  0x13   :  { %283 = vmatprep.mubr.f32.mxu0 %v4244_v1 }
  0x16   :  { %2325 = vmatmul.mubr.msk.f32.gmra.mxu0 %vm143_vm1, %v3108_v5 }
  0x17   :  { %289 = vmatprep.mubr.f32.mxu0 %v4244_v1 }
  0x1a   :  { %2326 = vmatmul.mubr.msk.f32.gmra.mxu0 %vm143_vm1, %v3116_v6 }
  0x1b   :  { %295 = vmatprep.mubr.f32.mxu0 %v4244_v1 }
  0x1e   :  { %2327 = vmatmul.mubr.msk.f32.gmra.mxu0 %vm143_vm1, %v3124_v7 }
  0x1f   :  { %301 = vmatprep.mubr.f32.mxu0 %v4244_v1 }
  0x22   :  { %2328 = vmatmul.mubr.msk.f32.gmra.mxu0 %vm143_vm1, %v3132_v8 }
  0x23   :  { %307 = vmatprep.mubr.f32.mxu0 %v4244_v1 }
  0x26   :  { %2329 = vmatmul.mubr.msk.f32.gmra.mxu0 %vm143_vm1, %v3140_v9 }
  0x27   :  { %313 = vmatprep.mubr.f32.mxu0 %v4244_v1 }
  0x2a   :  { %2330 = vmatmul.mubr.msk.f32.gmra.mxu0 %vm143_vm1, %v3148_v10 }
  0x2b   :  { %319 = vmatprep.mubr.f32.mxu0 %v4244_v1 }
  0x2e   :  { %2331 = vmatmul.mubr.msk.f32.gmra.mxu0 %vm143_vm1, %v3156_v11 }
  0x2f   :  { %325 = vmatprep.mubr.f32.mxu0 %v4244_v1 }
  0x32   :  { %2332 = vmatmul.mubr.msk.f32.gmra.mxu0 %vm143_vm1, %v3164_v12 }
  0x33   :  { %331 = vmatprep.mubr.f32.mxu0 %v4244_v1 }
  0x36   :  { %2333 = vmatmul.mubr.msk.f32.gmra.mxu0 %vm143_vm1, %v3172_v13 }
  0x37   :  { %337 = vmatprep.mubr.f32.mxu0 %v4244_v1 }
  0x3a   :  { %2334 = vmatmul.mubr.msk.f32.gmra.mxu0 %vm143_vm1, %v3180_v14 }
  0x3b   :  { %343 = vmatprep.mubr.f32.mxu0 %v4244_v1 }
  0x3e   :  { %2335 = vmatmul.mubr.msk.f32.gmra.mxu0 %vm143_vm1, %v3188_v15 }
  0x3f   :  { %349 = vmatprep.mubr.f32.mxu0 %v4244_v1 }
  0x42   :  { %2336 = vmatmul.mubr.msk.f32.gmra.mxu0 %vm143_vm1, %v3196_v16 }
  0x43   :  { %355 = vmatprep.mubr.f32.mxu0 %v4244_v1 }
  0x46   :  { %2337 = vmatmul.mubr.msk.f32.gmra.mxu0 %vm143_vm1, %v3204_v17 }
  0x47   :  { %361 = vmatprep.mubr.f32.mxu0 %v4244_v1 }
  0x4a   :  { %2338 = vmatmul.mubr.msk.f32.gmra.mxu0 %vm143_vm1, %v3212_v18 }
  0x4b   :  { %367 = vmatprep.mubr.f32.mxu0 %v4244_v1 }
  0x4e   :  { %2339 = vmatmul.mubr.msk.f32.gmra.mxu0 %vm143_vm1, %v3220_v19 }
  0x4f   :  { %373 = vmatprep.mubr.f32.mxu0 %v4244_v1 }
  0x52   :  { %2340 = vmatmul.mubr.msk.f32.gmra.mxu0 %vm143_vm1, %v3228_v20 }
  0x53   :  { %2632 = vmatprep.mubr.msk.f32.mxu0 %vm668_vm2, %v3295_v59 }
  0xce   :  { %v273_v22 = vpop.f32.mrf.mxu0 }
  0xcf   :  { %555 = vrot.lane.b32.xlu0 %v273_v22, %s2983_s23 }
  0xd0   :  { %v3233_v23 = vpop.f32.mrf.mxu0 }
  0xd2   :  { %v279_v24 = vpop.f32.mrf.mxu0 }
  0xd4   :  { %v3235_v25 = vpop.f32.mrf.mxu0 }
  0xd6   :  { %v285_v26 = vpop.f32.mrf.mxu0 }
  0xd7   :  { %561 = vrot.lane.b32.xlu0 %v285_v26, %s2984_s24  ;;  %v3320_v26 = vld [vmem:[%s4226_s5 + $0x3] ss:$0 sm:$0xff] }
  0xd8   :  { %v3238_v27 = vpop.f32.mrf.mxu0 }
  0xda   :  { %v291_v28 = vpop.f32.mrf.mxu0 }
  0xdc   :  { %v3240_v29 = vpop.f32.mrf.mxu0 }
  0xde   :  { %v297_v30 = vpop.f32.mrf.mxu0 }
  0xdf   :  { %569 = vrot.lane.b32.xlu1 %v297_v30, %s2985_s29 }
  0xe0   :  { %v3243_v31 = vpop.f32.mrf.mxu0 }
  0xe2   :  { %v303_v32 = vpop.f32.mrf.mxu0 }
  0xe4   :  { %v3245_v33 = vpop.f32.mrf.mxu0 }
  0xe6   :  { %v309_v34 = vpop.f32.mrf.mxu0 }
  0xe7   :  { %577 = vrot.lane.b32.xlu1 %v309_v34, %s2986_s25 }
  0xe8   :  { %v3248_v35 = vpop.f32.mrf.mxu0 }
  0xea   :  { %v315_v37 = vpop.f32.mrf.mxu0 }
  0xeb   :  { %621 = vperm.xlu1 %2921, %v553_v36  }
  0xec   :  { %v3253_v38 = vpop.f32.mrf.mxu0 }
  0xee   :  { %v3255_v39 = vpop.f32.mrf.mxu0 }
  0xf0   :  { %v3257_v40 = vpop.f32.mrf.mxu0 }
  0xf2   :  { %v3259_v41 = vpop.f32.mrf.mxu0 }
  0xf4   :  { %v3261_v42 = vpop.f32.mrf.mxu0 }
  0xf5   :  { %4274 = vst [vmem:[#allocation2_spill] sm:$0xff] %v3261_v42 }
  0xf6   :  { %v333_v43 = vpop.f32.mrf.mxu0 }
  0xf7   :  { %587 = vrot.lane.b32.xlu0 %v333_v43, %s2987_s0  ;;  %v3328_v43 = vld [vmem:[%s4226_s5 + $0x5] ss:$0 sm:$0xff] }
  0xf8   :  { %v3264_v44 = vpop.f32.mrf.mxu0 }
  0xfa   :  { %v339_v45 = vpop.f32.mrf.mxu0 }
  0xfc   :  { %v3266_v46 = vpop.f32.mrf.mxu0 }
  0xfe   :  { %v345_v47 = vpop.f32.mrf.mxu0 }
  0xff   :  { %595 = vrot.lane.b32.xlu1 %v345_v47, %s2988_s30 }
 0x100   :  { %v3269_v48 = vpop.f32.mrf.mxu0 }
 0x102   :  { %v351_v49 = vpop.f32.mrf.mxu0 }
 0x103   :  { %557 = vrot.lane.b32.xlu1 %v279_v24, %s2983_s23 }
 0x104   :  { %v3272_v50 = vpop.f32.mrf.mxu0 }
 0x106   :  { %v357_v51 = vpop.f32.mrf.mxu0 }
 0x107   :  { %571 = vrot.lane.b32.xlu1 %v303_v32, %s2985_s29  ;;  %603 = vrot.lane.b32.xlu0 %v357_v51, %s2989_s18 }
 0x108   :  { %v3276_v52 = vpop.f32.mrf.mxu0 }
 0x10a   :  { %v363_v53 = vpop.f32.mrf.mxu0 }
 0x10b   :  { %589 = vrot.lane.b32.xlu1 %v339_v45, %s2987_s0 }
 0x10c   :  { %v3279_v54 = vpop.f32.mrf.mxu0 }
 0x10e   :  { %v369_v55 = vpop.f32.mrf.mxu0 }
 0x10f   :  { %605 = vrot.lane.b32.xlu1 %v363_v53, %s2989_s18  ;;  %611 = vrot.lane.b32.xlu0 %v369_v55, %s4242_s19  ;;  %v3339_v53 = vld [vmem:[%s4226_s5 + $0x7] ss:$0 sm:$0xff] }
 0x110   :  { %v3283_v56 = vpop.f32.mrf.mxu0 }
 0x112   :  { %v375_v57 = vpop.f32.mrf.mxu0 }
 0x113   :  { %563 = vrot.lane.b32.xlu0 %v291_v28, %s2984_s24  ;;  %613 = vrot.lane.b32.xlu1 %v375_v57, %s4242_s19 }
 0x117   :  { %579 = vrot.lane.b32.xlu0 %v315_v37, %s2986_s25 }
 0x11b   :  { %597 = vrot.lane.b32.xlu0 %v351_v49, %s2988_s30  ;;  %v3333_v49 = vld [vmem:[%s4226_s5 + $0x6] ss:$0 sm:$0xff] }
 0x11f   :  { %626 = vperm.xlu0 %2922, %v554_v58  }
 0x141   :  { %v556_v61 = vpop.permute.xlu0 %555 }
 0x142   :  { %v559_v28 = vmul.f32 %v3307_v2, %v556_v61 }
 0x149   :  { %v562_v0 = vpop.permute.xlu0 %561 }
 0x14a   :  { %v565_v22 = vmul.f32 %v3302_v63, %v562_v0  ;;  %v3347_v0 = vld [vmem:[%s4226_s5 + $0x8] ss:$0 sm:$0xff] }
 0x14c   :  { %v567_v32 = vadd.f32 %v565_v22, %v559_v28 }
 0x151   :  { %v570_v60 = vpop.permute.xlu1 %569 }
 0x152   :  { %v573_v30 = vmul.f32 %v3312_v21, %v570_v60 }
 0x154   :  { %v575_v36 = vadd.f32 %v573_v30, %v567_v32 }
 0x159   :  { %v578_v62 = vpop.permute.xlu1 %577 }
 0x15a   :  { %v581_v34 = vmul.f32 %v3320_v26, %v578_v62 }
 0x15c   :  { %v583_v47 = vadd.f32 %v581_v34, %v575_v36 }
 0x15e   :  { %v585_v57 = vadd.f32 %v583_v47, %v3255_v39 }
 0x166   :  { %v3315_v24 = vpop.permute.xlu1 %621 }
 0x169   :  { %v588_v45 = vpop.permute.xlu0 %587 }
 0x16a   :  { %v591_v51 = vmul.f32 %v3328_v43, %v588_v45 }
 0x16c   :  { %v593_v61 = vadd.f32 %v591_v51, %v585_v57 }
 0x171   :  { %v596_v37 = vpop.permute.xlu1 %595 }
 0x172   :  { %v599_v58 = vmul.f32 %v3333_v49, %v596_v37 }
 0x174   :  { %v601_v22 = vadd.f32 %v599_v58, %v593_v61 }
 0x175   :  { %v558_v60 = vpop.permute.xlu1 %557 }
 0x176   :  { %v560_v39 = vmul.f32 %v3307_v2, %v558_v60 }
 0x179   :  { %v604_v55 = vpop.permute.xlu0 %603  ;;  %v572_v30 = vpop.permute.xlu1 %571 }
 0x17a   :  { %v607_v62 = vmul.f32 %v3339_v53, %v604_v55  ;;  %v574_v51 = vmul.f32 %v3312_v21, %v572_v30 }
 0x17c   :  { %v609_v32 = vadd.f32 %v607_v62, %v601_v22 }
 0x17d   :  { %v590_v55 = vpop.permute.xlu1 %589 }
 0x181   :  { %v612_v28 = vpop.permute.xlu0 %611 }
 0x182   :  { %v615_v34 = vmul.f32 %v3347_v0, %v612_v28  ;;  %v592_v28 = vmul.f32 %v3328_v43, %v590_v55 }
 0x184   :  { %v617_v36 = vadd.f32 %v615_v34, %v609_v32  ;;  %v606_v32 = vpop.permute.xlu1 %605 }
 0x185   :  { %v564_v45 = vpop.permute.xlu0 %563 }
 0x186   :  { %v629_v37 = vadd.f32 %v3315_v24, %v617_v36  ;;  %v566_v47 = vmul.f32 %v3302_v63, %v564_v45 }
 0x188   :  { %v2361_v57 = vmul.f32 -1.442695, %v629_v37  ;;  %v568_v1 = vadd.f32 %v566_v47, %v560_v39  ;;  %v614_v30 = vpop.permute.xlu1 %613  ;;  %v608_v37 = vmul.f32 %v3339_v53, %v606_v32 }
 0x189   :  { %v580_v42 = vpop.permute.xlu0 %579  ;;  %v616_v47 = vmul.f32 %v3347_v0, %v614_v30  ;;  %v3375_v30 = vld [vmem:[%s4225_s3 + $0x10] sm:$0xff] }
 0x18a   :  { %2925 = vpow2.f32 %v2361_v57  ;;  %v576_v58 = vadd.f32 %v574_v51, %v568_v1  ;;  %v582_v61 = vmul.f32 %v3320_v26, %v580_v42 }
 0x18c   :  { %v584_v62 = vadd.f32 %v582_v61, %v576_v58 }
 0x18d   :  { %v598_v22 = vpop.permute.xlu0 %597 }
 0x18e   :  { %v586_v60 = vadd.f32 %v584_v62, %v3259_v41  ;;  %v600_v36 = vmul.f32 %v3333_v49, %v598_v22 }
 0x190   :  { %v594_v34 = vadd.f32 %v592_v28, %v586_v60 }
 0x192   :  { %v602_v45 = vadd.f32 %v600_v36, %v594_v34 }
 0x194   :  { %v610_v39 = vadd.f32 %v608_v37, %v602_v45  ;;  %v3369_v45 = vld [vmem:[%s4225_s3 + $0x8] sm:$0xff]  ;;  %v3385_v37 = vld [vmem:[%s4225_s3 + $0x18] sm:$0xff] }
 0x196   :  { %v618_v51 = vadd.f32 %v616_v47, %v610_v39  ;;  %v3390_v39 = vld [vmem:[%s4225_s3 + $0x20] sm:$0xff]  ;;  %v3399_v47 = vld [vmem:[%s4225_s3 + $0x28] sm:$0xff] }
 0x197   :  { %v2926_v1 = vpop.eup %2925 }
 0x198   :  { %v637_v42 = vadd.f32 1.0, %v2926_v1  ;;  %v3404_v1 = vld [vmem:[%s4225_s3 + $0x30] sm:$0xff] }
 0x199   :  { %4275 = vst [vmem:[#allocation3_spill] sm:$0xff] %v3404_v1 }
 0x19a   :  { %v3360_v57 = vpop.permute.xlu0 %626 }
 0x19b   :  { %v630_v55 = vadd.f32 %v3360_v57, %v618_v51  ;;  %v3413_v51 = vld [vmem:[%s4225_s3 + $0x38] sm:$0xff] }
 0x19c   :  { %4276 = vst [vmem:[#allocation4_spill] sm:$0xff] %v3413_v51 }
 0x19d   :  { %v2362_v58 = vmul.f32 -1.442695, %v630_v55  ;;  %2927 = vtanh.f32 %v630_v55  ;;  %v3427_v55 = vld [vmem:[%s4225_s3 + $0x48] sm:$0xff] }
 0x19e   :  { %2929 = vrcp.f32 %v637_v42  ;;  %v3418_v42 = vld [vmem:[%s4225_s3 + $0x40] sm:$0xff]  ;;  %4278 = vst [vmem:[#allocation6_spill] sm:$0xff] %v3427_v55 }
 0x19f   :  { %2931 = vpow2.f32 %v2362_v58  ;;  %4277 = vst [vmem:[#allocation5_spill] sm:$0xff] %v3418_v42  ;;  %v3432_v58 = vld [vmem:[%s4225_s3 + $0x50] sm:$0xff] }
 0x1a0   :  { %4279 = vst [vmem:[#allocation7_spill] sm:$0xff] %v3432_v58 }
 0x1aa   :  { %v2928_v41 = vpop.eup %2927 }
 0x1ab   :  { %v2930_v61 = vpop.eup %2929  ;;  %v645_v62 = vrot.slane %v2928_v41, 4  ;;  %v3441_v41 = vld [vmem:[%s4225_s3 + $0x58] sm:$0xff] }
 0x1ac   :  { %v2932_v22 = vpop.eup %2931  ;;  %4280 = vst [vmem:[#allocation8_spill] sm:$0xff] %v3441_v41 }
 0x1ad   :  { %v638_v28 = vadd.f32 1.0, %v2932_v22  ;;  %v3363_v32 = vmul.f32 %v2930_v61, %v645_v62  ;;  %v3446_v61 = vld [vmem:[%s4225_s3 + $0x60] sm:$0xff]  ;;  %v3455_v62 = vld [vmem:[%s4225_s3 + $0x68] sm:$0xff]  ;;  %v3460_v22 = vld [vmem:[%s4225_s3 + $0x70] sm:$0xff] }
 0x1ae   :  { %4281 = vst [vmem:[#allocation9_spill] sm:$0xff] %v3446_v61  ;;  %4282 = vst [vmem:[#allocation10_spill] sm:$0xff] %v3455_v62 }
 0x1af   :  { %2933 = vrcp.f32 %v638_v28  ;;  %4283 = vst [vmem:[#allocation11_spill] sm:$0xff] %v3460_v22  ;;  %v3469_v28 = vld [vmem:[%s4225_s3 + $0x78] sm:$0xff] }
 0x1b0   :  { %2935 = vtanh.f32 %v3363_v32  ;;  %4284 = vst [vmem:[#allocation12_spill] sm:$0xff] %v3469_v28 }
 0x1bc   :  { %v2934_v60 = vpop.eup %2933 }
 0x1bd   :  { %v2936_v34 = vpop.eup %2935 }
 0x1be   :  { %v649_v36 = vmul.f32 %v2936_v34, %v2934_v60  ;;  %v3474_v60 = vld [vmem:[%s4225_s3 + $0x80] sm:$0xff]  ;;  %v3483_v34 = vld [vmem:[%s4225_s3 + $0x88] sm:$0xff] }
 0x1bf   :  { %4285 = vst [vmem:[#allocation13_spill] sm:$0xff] %v3474_v60  ;;  %4286 = vst [vmem:[#allocation14_spill] sm:$0xff] %v3483_v34 }
 0x1c0   :  { %2630 = vmatprep.subr.msk.mxu0 %vm723_vm3, %v649_v36 }
 0x1c1   :  { %2631 = vmatpush3.msk.msra.mxu0 %vm723_vm3, %v649_v36  ;;  %v3489_v36 = vpop.f32.mrf.mxu0 }
 0x1c2   :  { %2633 = vmatmul.mubr.msk.f32.vlgmr.msra.gmra.mxu0 %vm668_vm2, %v3369_v45 }
 0x1c3   :  { %2635 = vmatprep.mubr.msk.f32.mxu0 %vm668_vm2, %v3375_v30 }
 0x1c6   :  { %2636 = vmatmul.mubr.msk.f32.gmra.mxu0 %vm668_vm2, %v3385_v37 }
 0x1c7   :  { %2638 = vmatprep.mubr.msk.f32.mxu0 %vm668_vm2, %v3390_v39 }
 0x1ca   :  { %2639 = vmatmul.mubr.msk.f32.gmra.mxu0 %vm668_vm2, %v3399_v47 }
 0x1cb   :  { %2641 = vmatprep.mubr.msk.f32.mxu0 %vm668_vm2, %v3404_v1 }
 0x1ce   :  { %2642 = vmatmul.mubr.msk.f32.gmra.mxu0 %vm668_vm2, %v3413_v51 }
 0x1cf   :  { %2644 = vmatprep.mubr.msk.f32.mxu0 %vm668_vm2, %v3418_v42  ;;  %v138_v42 = vld [vmem:[%s4272_s26 + $0x8] sm:$0x77]  ;;  %s4288_s26 = smov 119  }
 0x1d0   :  { %v142_v1 = vcombine.high %v138_v42, %v138_v42 }
 0x1d2   :  { %2645 = vmatmul.mubr.msk.f32.gmra.mxu0 %vm668_vm2, %v3427_v55  ;;  %2341 = vmatprep.subr.msk.mxu1 %vm198_vm0, %v142_v1 }
 0x1d3   :  { %2647 = vmatprep.mubr.msk.f32.mxu0 %vm668_vm2, %v3432_v58  ;;  %2342 = vmatpush1.msk.msra.mxu1 %vm198_vm0, %v138_v42 }
 0x1d4   :  { %2343 = vmatmul.mubr.msk.f32.vlgmr.msra.gmra.mxu1 %vm143_vm1, %v3090_v3 }
 0x1d6   :  { %2648 = vmatmul.mubr.msk.f32.gmra.mxu0 %vm668_vm2, %v3441_v41 }
 0x1d7   :  { %2650 = vmatprep.mubr.msk.f32.mxu0 %vm668_vm2, %v3446_v61 }
 0x1da   :  { %2651 = vmatmul.mubr.msk.f32.gmra.mxu0 %vm668_vm2, %v3455_v62 }
 0x1db   :  { %2653 = vmatprep.mubr.msk.f32.mxu0 %vm668_vm2, %v3460_v22 }
 0x1de   :  { %2654 = vmatmul.mubr.msk.f32.gmra.mxu0 %vm668_vm2, %v3469_v28 }
 0x1df   :  { %2656 = vmatprep.mubr.msk.f32.mxu0 %vm668_vm2, %v3474_v60 }
 0x1e2   :  { %2657 = vmatmul.mubr.msk.f32.gmra.mxu0 %vm668_vm2, %v3483_v34 }
 0x1e3   :  { %2690 = vmatprep.mubr.msk.f32.mxu0 %vm668_vm2, %v3295_v59 }
 0x282   :  { %v2634_v22 = vpop.f32.mrf.mxu0 }
 0x284   :  { %v793_v62 = vpop.f32.mrf.mxu0 }
 0x285   :  { %v882_v28 = vadd.f32 %v793_v62, %v3233_v23 }
 0x286   :  { %v2637_v61 = vpop.f32.mrf.mxu0 }
 0x287   :  { %900 = vrot.lane.b32.xlu1 %v882_v28, %s2983_s23 }
 0x288   :  { %v803_v60 = vpop.f32.mrf.mxu0 }
 0x289   :  { %v884_v41 = vadd.f32 %v803_v60, %v3238_v27 }
 0x28a   :  { %v2640_v58 = vpop.f32.mrf.mxu0 }
 0x28b   :  { %906 = vrot.lane.b32.xlu0 %v884_v41, %s2984_s24 }
 0x28c   :  { %v813_v55 = vpop.f32.mrf.mxu0 }
 0x28d   :  { %v886_v34 = vadd.f32 %v813_v55, %v3243_v31  ;;  %v4287_v31 = vmov 0.0  }
 0x28e   :  { %v2643_v51 = vpop.f32.mrf.mxu0  ;;  %450 = vmatprep.mubr.f32.mxu1 %v4287_v31 }
 0x28f   :  { %914 = vrot.lane.b32.xlu1 %v886_v34, %s2985_s29  ;;  %2344 = vmatmul.mubr.msk.f32.gmra.mxu1 %vm143_vm1, %v3100_v4 }
 0x290   :  { %v823_v23 = vpop.f32.mrf.mxu0  ;;  %456 = vmatprep.mubr.f32.mxu1 %v4287_v31 }
 0x291   :  { %v888_v62 = vadd.f32 %v823_v23, %v3248_v35 }
 0x292   :  { %v3503_v27 = vpop.f32.mrf.mxu0 }
 0x293   :  { %922 = vrot.lane.b32.xlu0 %v888_v62, %s2986_s25  ;;  %2345 = vmatmul.mubr.msk.f32.gmra.mxu1 %vm143_vm1, %v3108_v5 }
 0x294   :  { %v3509_v55 = vpop.f32.mrf.mxu0  ;;  %462 = vmatprep.mubr.f32.mxu1 %v4287_v31 }
 0x296   :  { %v2649_v41 = vpop.f32.mrf.mxu0 }
 0x297   :  { %2346 = vmatmul.mubr.msk.f32.gmra.mxu1 %vm143_vm1, %v3116_v6 }
 0x298   :  { %v843_v35 = vpop.f32.mrf.mxu0  ;;  %468 = vmatprep.mubr.f32.mxu1 %v4287_v31 }
 0x299   :  { %v892_v1 = vadd.f32 %v843_v35, %v3264_v44 }
 0x29a   :  { %v2652_v42 = vpop.f32.mrf.mxu0 }
 0x29b   :  { %932 = vrot.lane.b32.xlu1 %v892_v1, %s2987_s0  ;;  %2347 = vmatmul.mubr.msk.f32.gmra.mxu1 %vm143_vm1, %v3124_v7  ;;  %v885_v7 = vadd.f32 %v2637_v61, %v3240_v29 }
 0x29c   :  { %v853_v3 = vpop.f32.mrf.mxu0  ;;  %474 = vmatprep.mubr.f32.mxu1 %v4287_v31 }
 0x29d   :  { %v894_v28 = vadd.f32 %v853_v3, %v3269_v48  ;;  %v883_v48 = vadd.f32 %v2634_v22, %v3235_v25  ;;  %v893_v25 = vadd.f32 %v2649_v41, %v3266_v46 }
 0x29e   :  { %v2655_v60 = vpop.f32.mrf.mxu0 }
 0x29f   :  { %940 = vrot.lane.b32.xlu0 %v894_v28, %s2988_s30  ;;  %2348 = vmatmul.mubr.msk.f32.gmra.mxu1 %vm143_vm1, %v3132_v8  ;;  %v889_v8 = vadd.f32 %v2643_v51, %v3253_v38  ;;  %v897_v29 = vadd.f32 %v2655_v60, %v3279_v54 }
 0x2a0   :  { %v863_v4 = vpop.f32.mrf.mxu0  ;;  %480 = vmatprep.mubr.f32.mxu1 %v4287_v31 }
 0x2a1   :  { %v896_v44 = vadd.f32 %v863_v4, %v3276_v52  ;;  %v887_v52 = vadd.f32 %v2640_v58, %v3245_v33 }
 0x2a2   :  { %v2658_v34 = vpop.f32.mrf.mxu0 }
 0x2a3   :  { %948 = vrot.lane.b32.xlu1 %v896_v44, %s2989_s18  ;;  %2349 = vmatmul.mubr.msk.f32.gmra.mxu1 %vm143_vm1, %v3140_v9  ;;  %v895_v9 = vadd.f32 %v2652_v42, %v3272_v50  ;;  %v890_v50 = vadd.f32 %v3509_v55, %v3257_v40 }
 0x2a4   :  { %v873_v5 = vpop.f32.mrf.mxu0  ;;  %486 = vmatprep.mubr.f32.mxu1 %v4287_v31 }
 0x2a5   :  { %v898_v6 = vadd.f32 %v873_v5, %v3283_v56 }
 0x2a7   :  { %902 = vrot.lane.b32.xlu1 %v883_v48, %s2983_s23  ;;  %956 = vrot.lane.b32.xlu0 %v898_v6, %s4288_s26  ;;  %v4289_v6 = vld [vmem:[#allocation2_spill] sm:$0xff] }
 0x2a8   :  { %2350 = vmatmul.mubr.msk.f32.gmra.mxu1 %vm143_vm1, %v3148_v10  ;;  %v899_v10 = vadd.f32 %v2658_v34, %v3489_v36 }
 0x2a9   :  { %492 = vmatprep.mubr.f32.mxu1 %v4287_v31 }
 0x2ab   :  { %916 = vrot.lane.b32.xlu1 %v887_v52, %s2985_s29  ;;  %908 = vrot.lane.b32.xlu0 %v885_v7, %s2984_s24  ;;  %v891_v7 = vadd.f32 %v3503_v27, %v4289_v6 }
 0x2ac   :  { %2351 = vmatmul.mubr.msk.f32.gmra.mxu1 %vm143_vm1, %v3156_v11 }
 0x2ad   :  { %498 = vmatprep.mubr.f32.mxu1 %v4287_v31 }
 0x2af   :  { %934 = vrot.lane.b32.xlu1 %v893_v25, %s2987_s0  ;;  %924 = vrot.lane.b32.xlu0 %v889_v8, %s2986_s25 }
 0x2b0   :  { %2352 = vmatmul.mubr.msk.f32.gmra.mxu1 %vm143_vm1, %v3164_v12 }
 0x2b1   :  { %504 = vmatprep.mubr.f32.mxu1 %v4287_v31 }
 0x2b3   :  { %950 = vrot.lane.b32.xlu1 %v897_v29, %s2989_s18  ;;  %942 = vrot.lane.b32.xlu0 %v895_v9, %s2988_s30 }
 0x2b4   :  { %2353 = vmatmul.mubr.msk.f32.gmra.mxu1 %vm143_vm1, %v3172_v13 }
 0x2b5   :  { %510 = vmatprep.mubr.f32.mxu1 %v4287_v31 }
 0x2b7   :  { %958 = vrot.lane.b32.xlu0 %v899_v10, %s4288_s26 }
 0x2b8   :  { %2354 = vmatmul.mubr.msk.f32.gmra.mxu1 %vm143_vm1, %v3180_v14 }
 0x2b9   :  { %516 = vmatprep.mubr.f32.mxu1 %v4287_v31 }
 0x2bc   :  { %2355 = vmatmul.mubr.msk.f32.gmra.mxu1 %vm143_vm1, %v3188_v15 }
 0x2bd   :  { %522 = vmatprep.mubr.f32.mxu1 %v4287_v31 }
 0x2c0   :  { %2356 = vmatmul.mubr.msk.f32.gmra.mxu1 %vm143_vm1, %v3196_v16 }
 0x2c1   :  { %528 = vmatprep.mubr.f32.mxu1 %v4287_v31 }
 0x2c4   :  { %2357 = vmatmul.mubr.msk.f32.gmra.mxu1 %vm143_vm1, %v3204_v17 }
 0x2c5   :  { %534 = vmatprep.mubr.f32.mxu1 %v4287_v31 }
 0x2c8   :  { %2358 = vmatmul.mubr.msk.f32.gmra.mxu1 %vm143_vm1, %v3212_v18 }
 0x2c9   :  { %540 = vmatprep.mubr.f32.mxu1 %v4287_v31 }
 0x2cc   :  { %2359 = vmatmul.mubr.msk.f32.gmra.mxu1 %vm143_vm1, %v3220_v19 }
 0x2cd   :  { %546 = vmatprep.mubr.f32.mxu1 %v4287_v31 }
 0x2d0   :  { %2360 = vmatmul.mubr.msk.f32.gmra.mxu1 %vm143_vm1, %v3228_v20 }
 0x2d1   :  { %2661 = vmatprep.mubr.msk.f32.mxu1 %vm668_vm2, %v3295_v59 }
 0x2f9   :  { %v901_v11 = vpop.permute.xlu1 %900 }
 0x2fa   :  { %v904_v16 = vmul.f32 %v3307_v2, %v901_v11 }
 0x2fd   :  { %v907_v12 = vpop.permute.xlu0 %906 }
 0x2fe   :  { %v910_v14 = vmul.f32 %v3302_v63, %v907_v12 }
 0x300   :  { %v912_v18 = vadd.f32 %v910_v14, %v904_v16 }
 0x301   :  { %v915_v13 = vpop.permute.xlu1 %914 }
 0x302   :  { %v918_v17 = vmul.f32 %v3312_v21, %v915_v13 }
 0x304   :  { %v920_v33 = vadd.f32 %v918_v17, %v912_v18 }
 0x305   :  { %v923_v15 = vpop.permute.xlu0 %922 }
 0x306   :  { %v926_v19 = vmul.f32 %v3320_v26, %v923_v15 }
 0x308   :  { %v928_v46 = vadd.f32 %v926_v19, %v920_v33 }
 0x30a   :  { %v930_v56 = vadd.f32 %v928_v46, %v890_v50 }
 0x30d   :  { %v933_v38 = vpop.permute.xlu1 %932 }
 0x30e   :  { %v936_v54 = vmul.f32 %v3328_v43, %v933_v38  ;;  %v980_v38 = vrot.slane %v3363_v32, 4  ;;  %v4290_v32 = vld [vmem:[#allocation3_spill] sm:$0xff] }
 0x310   :  { %v938_v58 = vadd.f32 %v936_v54, %v930_v56 }
 0x311   :  { %v941_v20 = vpop.permute.xlu0 %940 }
 0x312   :  { %v944_v59 = vmul.f32 %v3333_v49, %v941_v20 }
 0x314   :  { %v946_v22 = vadd.f32 %v944_v59, %v938_v58 }
 0x315   :  { %v949_v51 = vpop.permute.xlu1 %948 }
 0x316   :  { %v952_v61 = vmul.f32 %v3339_v53, %v949_v51 }
 0x318   :  { %v954_v62 = vadd.f32 %v952_v61, %v946_v22 }
 0x319   :  { %v903_v36 = vpop.permute.xlu1 %902  ;;  %v957_v23 = vpop.permute.xlu0 %956 }
 0x31a   :  { %v960_v41 = vmul.f32 %v3347_v0, %v957_v23  ;;  %v905_v40 = vmul.f32 %v3307_v2, %v903_v36 }
 0x31c   :  { %v962_v35 = vadd.f32 %v960_v41, %v954_v62  ;;  %v4291_v41 = vld [vmem:[#allocation4_spill] sm:$0xff] }
 0x31d   :  { %v917_v1 = vpop.permute.xlu1 %916  ;;  %v909_v42 = vpop.permute.xlu0 %908 }
 0x31e   :  { %v964_v55 = vadd.f32 %v962_v35, %v3315_v24  ;;  %v911_v3 = vmul.f32 %v3302_v63, %v909_v42  ;;  %v919_v60 = vmul.f32 %v3312_v21, %v917_v1  ;;  %v4292_v35 = vld [vmem:[#allocation5_spill] sm:$0xff]  ;;  %v4293_v1 = vld [vmem:[#allocation6_spill] sm:$0xff]  ;;  %v4294_v42 = vld [vmem:[#allocation7_spill] sm:$0xff] }
 0x320   :  { %v2382_v28 = vmul.f32 -1.442695, %v964_v55  ;;  %v913_v4 = vadd.f32 %v911_v3, %v905_v40  ;;  %v4295_v40 = vld [vmem:[#allocation8_spill] sm:$0xff]  ;;  %v4296_v55 = vld [vmem:[#allocation9_spill] sm:$0xff]  ;;  %v4297_v3 = vld [vmem:[#allocation10_spill] sm:$0xff] }
 0x321   :  { %v935_v44 = vpop.permute.xlu1 %934  ;;  %v925_v34 = vpop.permute.xlu0 %924 }
 0x322   :  { %2937 = vpow2.f32 %v2382_v28  ;;  %v921_v5 = vadd.f32 %v919_v60, %v913_v4  ;;  %v927_v48 = vmul.f32 %v3320_v26, %v925_v34  ;;  %v937_v25 = vmul.f32 %v3328_v43, %v935_v44  ;;  %v4298_v28 = vld [vmem:[#allocation11_spill] sm:$0xff]  ;;  %v4299_v60 = vld [vmem:[#allocation12_spill] sm:$0xff]  ;;  %v4300_v4 = vld [vmem:[#allocation13_spill] sm:$0xff]  ;;  %v446_v34 = vpop.f32.mrf.mxu1 }
 0x323   :  { %v4301_v44 = vld [vmem:[#allocation14_spill] sm:$0xff] }
 0x324   :  { %v929_v52 = vadd.f32 %v927_v48, %v921_v5  ;;  %v3650_v5 = vpop.f32.mrf.mxu1 }
 0x325   :  { %v943_v8 = vpop.permute.xlu0 %942  ;;  %v951_v29 = vpop.permute.xlu1 %950 }
 0x326   :  { %v931_v9 = vadd.f32 %v929_v52, %v891_v7  ;;  %v945_v11 = vmul.f32 %v3333_v49, %v943_v8  ;;  %v953_v13 = vmul.f32 %v3339_v53, %v951_v29 }
 0x328   :  { %v939_v10 = vadd.f32 %v937_v25, %v931_v9 }
 0x329   :  { %v959_v12 = vpop.permute.xlu0 %958 }
 0x32a   :  { %v947_v14 = vadd.f32 %v945_v11, %v939_v10  ;;  %v961_v16 = vmul.f32 %v3347_v0, %v959_v12 }
 0x32c   :  { %v955_v15 = vadd.f32 %v953_v13, %v947_v14 }
 0x32e   :  { %v963_v17 = vadd.f32 %v961_v16, %v955_v15 }
 0x32f   :  { %v2938_v18 = vpop.eup %2937 }
 0x330   :  { %v972_v19 = vadd.f32 1.0, %v2938_v18  ;;  %v965_v27 = vadd.f32 %v963_v17, %v3360_v57 }
 0x332   :  { %2939 = vrcp.f32 %v972_v19  ;;  %v2383_v33 = vmul.f32 -1.442695, %v965_v27 }
 0x333   :  { %2941 = vtanh.f32 %v965_v27 }
 0x334   :  { %2943 = vpow2.f32 %v2383_v33 }
 0x33f   :  { %v2940_v46 = vpop.eup %2939 }
 0x340   :  { %v2942_v20 = vpop.eup %2941  ;;  %v982_v50 = vmul.f32 %v2940_v46, %v980_v38 }
 0x341   :  { %v984_v54 = vrot.slane %v2942_v20, 4  ;;  %v2944_v59 = vpop.eup %2943 }
 0x342   :  { %v973_v58 = vadd.f32 1.0, %v2944_v59 }
 0x343   :  { %v986_v56 = vmul.f32 %v2940_v46, %v984_v54 }
 0x345   :  { %v988_v51 = vrot.slane %v986_v56, 4 }
 0x347   :  { %v3610_v61 = vadd.f32 %v988_v51, %v982_v50 }
 0x349   :  { %2945 = vtanh.f32 %v3610_v61 }
 0x34a   :  { %2947 = vrcp.f32 %v973_v58 }
 0x34f   :  { %v3652_v48 = vpop.f32.mrf.mxu1 }
 0x351   :  { %v3654_v6 = vpop.f32.mrf.mxu1 }
 0x352   :  { %4302 = vst [vmem:[#allocation2_spill] sm:$0xff] %v3654_v6 }
 0x353   :  { %v458_v7 = vpop.f32.mrf.mxu1 }
 0x355   :  { %v3656_v52 = vpop.f32.mrf.mxu1 }
 0x356   :  { %v2946_v22 = vpop.eup %2945 }
 0x357   :  { %v993_v36 = vrot.slane %v2946_v22, 4  ;;  %v2948_v23 = vpop.eup %2947  ;;  %v3658_v8 = vpop.f32.mrf.mxu1 }
 0x359   :  { %v995_v62 = vmul.f32 %v2948_v23, %v993_v36  ;;  %v3660_v25 = vpop.f32.mrf.mxu1 }
 0x35a   :  { %4303 = vst [vmem:[#allocation3_spill] sm:$0xff] %v3660_v25 }
 0x35b   :  { %2659 = vmatprep.subr.msk.mxu1 %vm723_vm3, %v995_v62  ;;  %v470_v9 = vpop.f32.mrf.mxu1 }
 0x35c   :  { %2660 = vmatpush3.msk.msra.mxu1 %vm723_vm3, %v995_v62 }
 0x35d   :  { %2662 = vmatmul.mubr.msk.f32.vlgmr.msra.gmra.mxu1 %vm668_vm2, %v3369_v45  ;;  %2717 = vmatprep.subr.mxu1 %v4287_v31  ;;  %v3662_v29 = vpop.f32.mrf.mxu1 }
 0x35e   :  { %2664 = vmatprep.mubr.msk.f32.mxu1 %vm668_vm2, %v3375_v30  ;;  %4304 = vst [vmem:[#allocation4_spill] sm:$0xff] %v3662_v29 }
 0x35f   :  { %v3664_v10 = vpop.f32.mrf.mxu1 }
 0x361   :  { %2665 = vmatmul.mubr.msk.f32.gmra.mxu1 %vm668_vm2, %v3385_v37  ;;  %v3666_v11 = vpop.f32.mrf.mxu1 }
 0x362   :  { %2667 = vmatprep.mubr.msk.f32.mxu1 %vm668_vm2, %v3390_v39  ;;  %4305 = vst [vmem:[#allocation5_spill] sm:$0xff] %v3666_v11 }
 0x363   :  { %v482_v12 = vpop.f32.mrf.mxu1 }
 0x365   :  { %2668 = vmatmul.mubr.msk.f32.gmra.mxu1 %vm668_vm2, %v3399_v47  ;;  %v3668_v13 = vpop.f32.mrf.mxu1 }
 0x366   :  { %2670 = vmatprep.mubr.msk.f32.mxu1 %vm668_vm2, %v4290_v32  ;;  %4306 = vst [vmem:[#allocation6_spill] sm:$0xff] %v3668_v13 }
 0x368   :  { %v488_v14 = vpop.f32.mrf.mxu1 }
 0x369   :  { %2671 = vmatmul.mubr.msk.f32.gmra.mxu1 %vm668_vm2, %v4291_v41 }
 0x36a   :  { %2673 = vmatprep.mubr.msk.f32.mxu1 %vm668_vm2, %v4292_v35  ;;  %v3670_v15 = vpop.f32.mrf.mxu1 }
 0x36b   :  { %4307 = vst [vmem:[#allocation7_spill] sm:$0xff] %v3670_v15 }
 0x36c   :  { %v3672_v16 = vpop.f32.mrf.mxu1 }
 0x36d   :  { %2674 = vmatmul.mubr.msk.f32.gmra.mxu1 %vm668_vm2, %v4293_v1 }
 0x36e   :  { %2676 = vmatprep.mubr.msk.f32.mxu1 %vm668_vm2, %v4294_v42  ;;  %v3674_v17 = vpop.f32.mrf.mxu1 }
 0x36f   :  { %4308 = vst [vmem:[#allocation8_spill] sm:$0xff] %v3674_v17 }
 0x370   :  { %v3676_v18 = vpop.f32.mrf.mxu1 }
 0x371   :  { %2677 = vmatmul.mubr.msk.f32.gmra.mxu1 %vm668_vm2, %v4295_v40 }
 0x372   :  { %2679 = vmatprep.mubr.msk.f32.mxu1 %vm668_vm2, %v4296_v55  ;;  %v3678_v19 = vpop.f32.mrf.mxu1 }
 0x373   :  { %4309 = vst [vmem:[#allocation9_spill] sm:$0xff] %v3678_v19 }
 0x374   :  { %v506_v27 = vpop.f32.mrf.mxu1 }
 0x375   :  { %2680 = vmatmul.mubr.msk.f32.gmra.mxu1 %vm668_vm2, %v4297_v3 }
 0x376   :  { %2682 = vmatprep.mubr.msk.f32.mxu1 %vm668_vm2, %v4298_v28  ;;  %v3680_v33 = vpop.f32.mrf.mxu1 }
 0x377   :  { %4310 = vst [vmem:[#allocation10_spill] sm:$0xff] %v3680_v33 }
 0x378   :  { %v512_v38 = vpop.f32.mrf.mxu1 }
 0x379   :  { %2683 = vmatmul.mubr.msk.f32.gmra.mxu1 %vm668_vm2, %v4299_v60 }
 0x37a   :  { %2685 = vmatprep.mubr.msk.f32.mxu1 %vm668_vm2, %v4300_v4  ;;  %v3682_v46 = vpop.f32.mrf.mxu1 }
 0x37b   :  { %4311 = vst [vmem:[#allocation11_spill] sm:$0xff] %v3682_v46 }
 0x37c   :  { %v518_v20 = vpop.f32.mrf.mxu1 }
 0x37d   :  { %2686 = vmatmul.mubr.msk.f32.gmra.mxu1 %vm668_vm2, %v4301_v44 }
 0x37e   :  { %v3684_v50 = vpop.f32.mrf.mxu1  ;;  %2749 = vmatprep.mubr.msk.f32.mxu1 %vm2991_vm4, %v4287_v31 }
 0x37f   :  { %4312 = vst [vmem:[#allocation12_spill] sm:$0xff] %v3684_v50 }
 0x380   :  { %v524_v54 = vpop.f32.mrf.mxu1 }
 0x382   :  { %v3686_v56 = vpop.f32.mrf.mxu1 }
 0x383   :  { %4313 = vst [vmem:[#allocation13_spill] sm:$0xff] %v3686_v56 }
 0x384   :  { %v530_v59 = vpop.f32.mrf.mxu1 }
 0x386   :  { %v3688_v51 = vpop.f32.mrf.mxu1 }
 0x387   :  { %4314 = vst [vmem:[#allocation14_spill] sm:$0xff] %v3688_v51 }
 0x388   :  { %v536_v58 = vpop.f32.mrf.mxu1 }
 0x38a   :  { %v3690_v22 = vpop.f32.mrf.mxu1 }
 0x38b   :  { %4315 = vst [vmem:[#allocation15_spill] sm:$0xff] %v3690_v22 }
 0x38c   :  { %v542_v36 = vpop.f32.mrf.mxu1 }
 0x38e   :  { %v3692_v23 = vpop.f32.mrf.mxu1 }
 0x38f   :  { %4316 = vst [vmem:[#allocation16_spill] sm:$0xff] %v3692_v23 }
 0x390   :  { %v548_v62 = vpop.f32.mrf.mxu1 }
 0x392   :  { %v3694_v19 = vpop.f32.mrf.mxu1 }
 0x393   :  { %4317 = vst [vmem:[#allocation17_spill] sm:$0xff] %v3694_v19 }
 0x41d   :  { %v2663_v17 = vpop.f32.mrf.mxu1 }
 0x41f   :  { %v1065_v46 = vpop.f32.mrf.mxu1 }
 0x420   :  { %v1154_v15 = vadd.f32 %v1065_v46, %v446_v34 }
 0x421   :  { %v2666_v11 = vpop.f32.mrf.mxu1 }
 0x422   :  { %1172 = vrot.lane.b32.xlu1 %v1154_v15, %s2983_s23 }
 0x423   :  { %v1075_v25 = vpop.f32.mrf.mxu1 }
 0x424   :  { %v1156_v56 = vadd.f32 %v1075_v25, %v458_v7 }
 0x425   :  { %v2669_v6 = vpop.f32.mrf.mxu1 }
 0x426   :  { %1178 = vrot.lane.b32.xlu0 %v1156_v56, %s2984_s24 }
 0x427   :  { %v1085_v51 = vpop.f32.mrf.mxu1 }
 0x428   :  { %v1158_v50 = vadd.f32 %v1085_v51, %v470_v9 }
 0x429   :  { %v2672_v22 = vpop.f32.mrf.mxu1 }
 0x42a   :  { %1186 = vrot.lane.b32.xlu1 %v1158_v50, %s2985_s29 }
 0x42b   :  { %v1095_v23 = vpop.f32.mrf.mxu1 }
 0x42c   :  { %v1160_v33 = vadd.f32 %v1095_v23, %v482_v12 }
 0x42d   :  { %v3699_v13 = vpop.f32.mrf.mxu1 }
 0x42e   :  { %1194 = vrot.lane.b32.xlu0 %v1160_v33, %s2986_s25  ;;  %v1155_v33 = vadd.f32 %v2663_v17, %v3652_v48 }
 0x42f   :  { %v1105_v34 = vpop.f32.mrf.mxu1 }
 0x431   :  { %v2678_v46 = vpop.f32.mrf.mxu1 }
 0x433   :  { %v1115_v19 = vpop.f32.mrf.mxu1 }
 0x434   :  { %v1164_v15 = vadd.f32 %v1115_v19, %v506_v27  ;;  %v1157_v19 = vadd.f32 %v2666_v11, %v3658_v8  ;;  %v1159_v27 = vadd.f32 %v2669_v6, %v3664_v10 }
 0x435   :  { %v2681_v29 = vpop.f32.mrf.mxu1 }
 0x436   :  { %1204 = vrot.lane.b32.xlu1 %v1164_v15, %s2987_s0  ;;  %v1167_v48 = vadd.f32 %v2681_v29, %v524_v54 }
 0x437   :  { %v1125_v7 = vpop.f32.mrf.mxu1 }
 0x438   :  { %v1166_v25 = vadd.f32 %v1125_v7, %v518_v20  ;;  %v1161_v20 = vadd.f32 %v2672_v22, %v488_v14 }
 0x439   :  { %v2684_v56 = vpop.f32.mrf.mxu1 }
 0x43a   :  { %1212 = vrot.lane.b32.xlu0 %v1166_v25, %s2988_s30  ;;  %v1169_v17 = vadd.f32 %v2684_v56, %v536_v58 }
 0x43b   :  { %v1135_v9 = vpop.f32.mrf.mxu1 }
 0x43c   :  { %v1168_v50 = vadd.f32 %v1135_v9, %v530_v59  ;;  %v1165_v59 = vadd.f32 %v2678_v46, %v512_v38 }
 0x43d   :  { %v2687_v51 = vpop.f32.mrf.mxu1 }
 0x43e   :  { %1220 = vrot.lane.b32.xlu1 %v1168_v50, %s2989_s18 }
 0x43f   :  { %v1145_v12 = vpop.f32.mrf.mxu1 }
 0x440   :  { %v1170_v23 = vadd.f32 %v1145_v12, %v542_v36  ;;  %v1171_v36 = vadd.f32 %v2687_v51, %v548_v62  ;;  %v1162_v62 = vadd.f32 %v1105_v34, %v3672_v16 }
 0x442   :  { %1174 = vrot.lane.b32.xlu1 %v1155_v33, %s2983_s23  ;;  %1228 = vrot.lane.b32.xlu0 %v1170_v23, %s4288_s26 }
 0x446   :  { %1188 = vrot.lane.b32.xlu1 %v1159_v27, %s2985_s29  ;;  %1180 = vrot.lane.b32.xlu0 %v1157_v19, %s2984_s24 }
 0x44a   :  { %1206 = vrot.lane.b32.xlu1 %v1165_v59, %s2987_s0  ;;  %1196 = vrot.lane.b32.xlu0 %v1161_v20, %s2986_s25 }
 0x44e   :  { %1222 = vrot.lane.b32.xlu1 %v1169_v17, %s2989_s18  ;;  %1214 = vrot.lane.b32.xlu0 %v1167_v48, %s2988_s30 }
 0x452   :  { %1230 = vrot.lane.b32.xlu0 %v1171_v36, %s4288_s26 }
 0x494   :  { %v1173_v6 = vpop.permute.xlu1 %1172 }
 0x495   :  { %v1176_v38 = vmul.f32 %v3307_v2, %v1173_v6 }
 0x498   :  { %v1179_v8 = vpop.permute.xlu0 %1178 }
 0x499   :  { %v1182_v11 = vmul.f32 %v3302_v63, %v1179_v8 }
 0x49b   :  { %v1184_v46 = vadd.f32 %v1182_v11, %v1176_v38 }
 0x49c   :  { %v1187_v10 = vpop.permute.xlu1 %1186 }
 0x49d   :  { %v1190_v22 = vmul.f32 %v3312_v21, %v1187_v10 }
 0x49f   :  { %v1192_v54 = vadd.f32 %v1190_v22, %v1184_v46  ;;  %v1163_v46 = vadd.f32 %v3699_v13, %v3676_v18 }
 0x4a0   :  { %v1195_v14 = vpop.permute.xlu0 %1194 }
 0x4a1   :  { %v1198_v29 = vmul.f32 %v3320_v26, %v1195_v14 }
 0x4a3   :  { %v1200_v15 = vadd.f32 %v1198_v29, %v1192_v54 }
 0x4a5   :  { %v1202_v56 = vadd.f32 %v1200_v15, %v1162_v62 }
 0x4a8   :  { %v1205_v58 = vpop.permute.xlu1 %1204 }
 0x4a9   :  { %v1208_v25 = vmul.f32 %v3328_v43, %v1205_v58 }
 0x4ab   :  { %v1210_v51 = vadd.f32 %v1208_v25, %v1202_v56 }
 0x4ac   :  { %v1213_v7 = vpop.permute.xlu0 %1212 }
 0x4ad   :  { %v1216_v9 = vmul.f32 %v3333_v49, %v1213_v7 }
 0x4af   :  { %v1218_v33 = vadd.f32 %v1216_v9, %v1210_v51 }
 0x4b0   :  { %v1221_v50 = vpop.permute.xlu1 %1220 }
 0x4b1   :  { %v1224_v12 = vmul.f32 %v3339_v53, %v1221_v50 }
 0x4b3   :  { %v1226_v27 = vadd.f32 %v1224_v12, %v1218_v33 }
 0x4b4   :  { %v1175_v23 = vpop.permute.xlu1 %1174  ;;  %v1229_v19 = vpop.permute.xlu0 %1228 }
 0x4b5   :  { %v1232_v20 = vmul.f32 %v3347_v0, %v1229_v19  ;;  %v1177_v16 = vmul.f32 %v3307_v2, %v1175_v23 }
 0x4b7   :  { %v1234_v59 = vadd.f32 %v1232_v20, %v1226_v27 }
 0x4b8   :  { %v1189_v48 = vpop.permute.xlu1 %1188  ;;  %v1181_v17 = vpop.permute.xlu0 %1180 }
 0x4b9   :  { %v1236_v34 = vadd.f32 %v1234_v59, %v3315_v24  ;;  %v1183_v36 = vmul.f32 %v3302_v63, %v1181_v17  ;;  %v1191_v8 = vmul.f32 %v3312_v21, %v1189_v48 }
 0x4bb   :  { %v2403_v6 = vmul.f32 -1.442695, %v1236_v34  ;;  %v1185_v10 = vadd.f32 %v1183_v36, %v1177_v16  ;;  %v4321_v36 = vld [vmem:[#allocation12_spill] sm:$0xff] }
 0x4bc   :  { %v1207_v11 = vpop.permute.xlu1 %1206  ;;  %v1197_v14 = vpop.permute.xlu0 %1196 }
 0x4bd   :  { %2949 = vpow2.f32 %v2403_v6  ;;  %v1193_v38 = vadd.f32 %v1191_v8, %v1185_v10  ;;  %v1199_v22 = vmul.f32 %v3320_v26, %v1197_v14  ;;  %v1209_v2 = vmul.f32 %v3328_v43, %v1207_v11  ;;  %v4322_v11 = vld [vmem:[#allocation14_spill] sm:$0xff] }
 0x4bf   :  { %v1201_v29 = vadd.f32 %v1199_v22, %v1193_v38 }
 0x4c0   :  { %v1215_v54 = vpop.permute.xlu0 %1214  ;;  %v1223_v15 = vpop.permute.xlu1 %1222 }
 0x4c1   :  { %v1203_v58 = vadd.f32 %v1201_v29, %v1163_v46  ;;  %v1217_v7 = vmul.f32 %v3333_v49, %v1215_v54  ;;  %v1225_v62 = vmul.f32 %v3339_v53, %v1223_v15  ;;  %v4323_v46 = vld [vmem:[#allocation2_spill] sm:$0xff]  ;;  %v4324_v54 = vld [vmem:[#allocation16_spill] sm:$0xff] }
 0x4c3   :  { %v1211_v63 = vadd.f32 %v1209_v2, %v1203_v58  ;;  %v4325_v58 = vld [vmem:[#allocation3_spill] sm:$0xff] }
 0x4c4   :  { %v1231_v21 = vpop.permute.xlu0 %1230 }
 0x4c5   :  { %v1219_v25 = vadd.f32 %v1217_v7, %v1211_v63  ;;  %v1233_v9 = vmul.f32 %v3347_v0, %v1231_v21  ;;  %v4326_v63 = vld [vmem:[#allocation5_spill] sm:$0xff]  ;;  %v4327_v21 = vld [vmem:[#allocation7_spill] sm:$0xff] }
 0x4c7   :  { %v1227_v56 = vadd.f32 %v1225_v62, %v1219_v25  ;;  %v4328_v25 = vld [vmem:[#allocation11_spill] sm:$0xff] }
 0x4c9   :  { %v1235_v26 = vadd.f32 %v1233_v9, %v1227_v56  ;;  %v4329_v9 = vld [vmem:[#allocation13_spill] sm:$0xff] }
 0x4ca   :  { %v2950_v50 = vpop.eup %2949 }
 0x4cb   :  { %v1237_v13 = vadd.f32 %v1235_v26, %v3360_v57  ;;  %v1244_v18 = vadd.f32 1.0, %v2950_v50  ;;  %v4330_v50 = vld [vmem:[#allocation15_spill] sm:$0xff] }
 0x4cd   :  { %v2404_v51 = vmul.f32 -1.442695, %v1237_v13  ;;  %2951 = vtanh.f32 %v1237_v13 }
 0x4ce   :  { %2953 = vrcp.f32 %v1244_v18  ;;  %v4331_v18 = vld [vmem:[#allocation17_spill] sm:$0xff] }
 0x4cf   :  { %2955 = vpow2.f32 %v2404_v51 }
 0x4da   :  { %v2952_v43 = vpop.eup %2951 }
 0x4db   :  { %v1253_v12 = vrot.slane %v2952_v43, 4  ;;  %v2954_v33 = vpop.eup %2953  ;;  %v1550_v43 = vld [vmem:[%s4227_s6 + $0x78] sm:$0xff] }
 0x4dc   :  { %v2956_v23 = vpop.eup %2955  ;;  %v1251_v53 = vmul.f32 %v2954_v33, %v3610_v61  ;;  %2718 = vmatpush3.msra.mxu1 %v1550_v43  ;;  %v2979_v43 = vld [vmem:[%s4226_s5 + $0x7] ss:$0 sm:$0xff] }
 0x4dd   :  { %v1255_v49 = vmul.f32 %v2954_v33, %v1253_v12  ;;  %v1245_v27 = vadd.f32 1.0, %v2956_v23  ;;  %2719 = vmatprep.subr.mxu1 %v4287_v31  ;;  %v1549_v12 = vld [vmem:[%s4227_s6 + $0x70] sm:$0xff]  ;;  %v2457_v33 = vld [vmem:[%s4227_s6 + $0x178] sm:$0xff] }
 0x4de   :  { %2720 = vmatpush3.msra.mxu1 %v1549_v12  ;;  %v2456_v23 = vld [vmem:[%s4227_s6 + $0x170] sm:$0xff] }
 0x4df   :  { %v1257_v19 = vrot.slane %v1255_v49, 4  ;;  %2721 = vmatprep.subr.mxu1 %v4287_v31  ;;  %v1548_v49 = vld [vmem:[%s4227_s6 + $0x68] sm:$0xff] }
 0x4e0   :  { %2722 = vmatpush3.msra.mxu1 %v1548_v49 }
 0x4e1   :  { %v3739_v20 = vadd.f32 %v1257_v19, %v1251_v53  ;;  %2723 = vmatprep.subr.mxu1 %v4287_v31  ;;  %v1547_v53 = vld [vmem:[%s4227_s6 + $0x60] sm:$0xff]  ;;  %v2455_v19 = vld [vmem:[%s4227_s6 + $0x168] sm:$0xff] }
 0x4e2   :  { %2724 = vmatpush3.msra.mxu1 %v1547_v53  ;;  %v2980_v53 = vld [vmem:[%s4226_s5 + $0x8] ss:$0 sm:$0xff] }
 0x4e3   :  { %2957 = vtanh.f32 %v3739_v20  ;;  %2725 = vmatprep.subr.mxu1 %v4287_v31 }
 0x4e4   :  { %2959 = vrcp.f32 %v1245_v27  ;;  %v1546_v27 = vld [vmem:[%s4227_s6 + $0x58] sm:$0xff] }
 0x4e5   :  { %2726 = vmatpush3.msra.mxu1 %v1546_v27 }
 0x4e6   :  { %2727 = vmatprep.subr.mxu1 %v4287_v31 }
 0x4f0   :  { %v2958_v0 = vpop.eup %2957 }
 0x4f1   :  { %v1262_v59 = vrot.slane %v2958_v0, 4  ;;  %v2960_v48 = vpop.eup %2959  ;;  %v2454_v0 = vld [vmem:[%s4227_s6 + $0x160] sm:$0xff] }
 0x4f3   :  { %v1264_v17 = vmul.f32 %v2960_v48, %v1262_v59  ;;  %v1545_v59 = vld [vmem:[%s4227_s6 + $0x50] sm:$0xff]  ;;  %v2453_v48 = vld [vmem:[%s4227_s6 + $0x158] sm:$0xff] }
 0x4f4   :  { %2728 = vmatpush3.msra.mxu1 %v1545_v59 }
 0x4f5   :  { %2688 = vmatprep.subr.msk.mxu0 %vm723_vm3, %v1264_v17  ;;  %2729 = vmatprep.subr.mxu1 %v4287_v31 }
 0x4f6   :  { %2689 = vmatpush3.msk.msra.mxu0 %vm723_vm3, %v1264_v17  ;;  %v1544_v17 = vld [vmem:[%s4227_s6 + $0x48] sm:$0xff] }
 0x4f7   :  { %2691 = vmatmul.mubr.msk.f32.vlgmr.msra.gmra.mxu0 %vm668_vm2, %v3369_v45  ;;  %2787 = vmatprep.subr.mxu0 %v4287_v31 }
 0x4f8   :  { %2693 = vmatprep.mubr.msk.f32.mxu0 %vm668_vm2, %v3375_v30  ;;  %2788 = vmatpush3.msra.mxu0 %v2457_v33 }
 0x4f9   :  { %2789 = vmatprep.subr.mxu0 %v4287_v31  ;;  %2730 = vmatpush3.msra.mxu1 %v1544_v17 }
 0x4fa   :  { %2790 = vmatpush3.msra.mxu0 %v2456_v23  ;;  %2731 = vmatprep.subr.mxu1 %v4287_v31 }
 0x4fb   :  { %2694 = vmatmul.mubr.msk.f32.gmra.mxu0 %vm668_vm2, %v3385_v37  ;;  %2791 = vmatprep.subr.mxu0 %v4287_v31 }
 0x4fc   :  { %2696 = vmatprep.mubr.msk.f32.mxu0 %vm668_vm2, %v3390_v39  ;;  %2792 = vmatpush3.msra.mxu0 %v2455_v19 }
 0x4fd   :  { %2793 = vmatprep.subr.mxu0 %v4287_v31 }
 0x4fe   :  { %2794 = vmatpush3.msra.mxu0 %v2454_v0 }
 0x4ff   :  { %2697 = vmatmul.mubr.msk.f32.gmra.mxu0 %vm668_vm2, %v3399_v47  ;;  %2795 = vmatprep.subr.mxu0 %v4287_v31 }
 0x500   :  { %2699 = vmatprep.mubr.msk.f32.mxu0 %vm668_vm2, %v4290_v32  ;;  %2796 = vmatpush3.msra.mxu0 %v2453_v48 }
 0x501   :  { %2797 = vmatprep.subr.mxu0 %v4287_v31 }
 0x503   :  { %2700 = vmatmul.mubr.msk.f32.gmra.mxu0 %vm668_vm2, %v4291_v41 }
 0x504   :  { %2702 = vmatprep.mubr.msk.f32.mxu0 %vm668_vm2, %v4292_v35  ;;  %v4318_v35 = vld [vmem:[#allocation4_spill] sm:$0xff] }
 0x507   :  { %2703 = vmatmul.mubr.msk.f32.gmra.mxu0 %vm668_vm2, %v4293_v1 }
 0x508   :  { %2705 = vmatprep.mubr.msk.f32.mxu0 %vm668_vm2, %v4294_v42 }
 0x50b   :  { %2706 = vmatmul.mubr.msk.f32.gmra.mxu0 %vm668_vm2, %v4295_v40 }
 0x50c   :  { %2708 = vmatprep.mubr.msk.f32.mxu0 %vm668_vm2, %v4296_v55  ;;  %v4319_v55 = vld [vmem:[#allocation6_spill] sm:$0xff] }
 0x50f   :  { %2709 = vmatmul.mubr.msk.f32.gmra.mxu0 %vm668_vm2, %v4297_v3 }
 0x510   :  { %2711 = vmatprep.mubr.msk.f32.mxu0 %vm668_vm2, %v4298_v28 }
 0x513   :  { %2712 = vmatmul.mubr.msk.f32.gmra.mxu0 %vm668_vm2, %v4299_v60 }
 0x514   :  { %2714 = vmatprep.mubr.msk.f32.mxu0 %vm668_vm2, %v4300_v4 }
 0x517   :  { %2715 = vmatmul.mubr.msk.f32.gmra.mxu0 %vm668_vm2, %v4301_v44 }
 0x518   :  { %2819 = vmatprep.mubr.msk.f32.mxu0 %vm2991_vm4, %v4287_v31 }
 0x5b7   :  { %v2692_v45 = vpop.f32.mrf.mxu0 }
 0x5b8   :  { %v1424_v29 = vadd.f32 %v2692_v45, %v4323_v46  ;;  %v2452_v45 = vld [vmem:[%s4227_s6 + $0x150] sm:$0xff]  ;;  %v2975_v46 = vld [vmem:[%s4226_s5 + $0x2] ss:$0 sm:$0xff] }
 0x5b9   :  { %v1334_v30 = vpop.f32.mrf.mxu0  ;;  %2798 = vmatpush3.msra.mxu0 %v2452_v45 }
 0x5ba   :  { %v1423_v37 = vadd.f32 %v1334_v30, %v3650_v5  ;;  %v4320_v5 = vld [vmem:[#allocation10_spill] sm:$0xff]  ;;  %2799 = vmatprep.subr.mxu0 %v4287_v31 }
 0x5bb   :  { %v2695_v39 = vpop.f32.mrf.mxu0  ;;  %v1543_v30 = vld [vmem:[%s4227_s6 + $0x40] sm:$0xff] }
 0x5bc   :  { %1441 = vrot.lane.b32.xlu1 %v1423_v37, %s2983_s23  ;;  %v1426_v15 = vadd.f32 %v2695_v39, %v4325_v58  ;;  %2732 = vmatpush3.msra.mxu1 %v1543_v30  ;;  %v2451_v37 = vld [vmem:[%s4227_s6 + $0x148] sm:$0xff]  ;;  %v1542_v39 = vld [vmem:[%s4227_s6 + $0x38] sm:$0xff] }
 0x5bd   :  { %v1344_v47 = vpop.f32.mrf.mxu0  ;;  %2733 = vmatprep.subr.mxu1 %v4287_v31  ;;  %2800 = vmatpush3.msra.mxu0 %v2451_v37 }
 0x5be   :  { %v1425_v61 = vadd.f32 %v1344_v47, %v3656_v52  ;;  %v2450_v47 = vld [vmem:[%s4227_s6 + $0x140] sm:$0xff]  ;;  %2734 = vmatpush3.msra.mxu1 %v1542_v39  ;;  %2801 = vmatprep.subr.mxu0 %v4287_v31 }
 0x5bf   :  { %v2698_v32 = vpop.f32.mrf.mxu0  ;;  %2735 = vmatprep.subr.mxu1 %v4287_v31  ;;  %2802 = vmatpush3.msra.mxu0 %v2450_v47 }
 0x5c0   :  { %1447 = vrot.lane.b32.xlu0 %v1425_v61, %s2984_s24  ;;  %v1428_v7 = vadd.f32 %v2698_v32, %v4326_v63  ;;  %v1541_v61 = vld [vmem:[%s4227_s6 + $0x30] sm:$0xff]  ;;  %v2449_v32 = vld [vmem:[%s4227_s6 + $0x138] sm:$0xff]  ;;  %2803 = vmatprep.subr.mxu0 %v4287_v31 }
 0x5c1   :  { %v1354_v41 = vpop.f32.mrf.mxu0  ;;  %2736 = vmatpush3.msra.mxu1 %v1541_v61  ;;  %2804 = vmatpush3.msra.mxu0 %v2449_v32 }
 0x5c2   :  { %v1427_v1 = vadd.f32 %v1354_v41, %v4318_v35  ;;  %v1540_v41 = vld [vmem:[%s4227_s6 + $0x28] sm:$0xff]  ;;  %v2448_v35 = vld [vmem:[%s4227_s6 + $0x130] sm:$0xff]  ;;  %2737 = vmatprep.subr.mxu1 %v4287_v31  ;;  %2805 = vmatprep.subr.mxu0 %v4287_v31 }
 0x5c3   :  { %v2701_v42 = vpop.f32.mrf.mxu0  ;;  %2738 = vmatpush3.msra.mxu1 %v1540_v41  ;;  %2806 = vmatpush3.msra.mxu0 %v2448_v35  ;;  %v4333_v35 = vld [vmem:[#allocation9_spill] sm:$0xff] }
 0x5c4   :  { %1455 = vrot.lane.b32.xlu1 %v1427_v1, %s2985_s29  ;;  %v1430_v62 = vadd.f32 %v2701_v42, %v4327_v21  ;;  %v1539_v1 = vld [vmem:[%s4227_s6 + $0x20] sm:$0xff]  ;;  %v2447_v42 = vld [vmem:[%s4227_s6 + $0x128] sm:$0xff]  ;;  %2739 = vmatprep.subr.mxu1 %v4287_v31 }
 0x5c5   :  { %v1364_v40 = vpop.f32.mrf.mxu0  ;;  %2740 = vmatpush3.msra.mxu1 %v1539_v1  ;;  %2807 = vmatprep.subr.mxu0 %v4287_v31 }
 0x5c6   :  { %v1429_v3 = vadd.f32 %v1364_v40, %v4319_v55  ;;  %v1538_v40 = vld [vmem:[%s4227_s6 + $0x18] sm:$0xff]  ;;  %v2446_v55 = vld [vmem:[%s4227_s6 + $0x120] sm:$0xff]  ;;  %2741 = vmatprep.subr.mxu1 %v4287_v31  ;;  %2808 = vmatpush3.msra.mxu0 %v2447_v42 }
 0x5c7   :  { %v3786_v28 = vpop.f32.mrf.mxu0  ;;  %2742 = vmatpush3.msra.mxu1 %v1538_v40  ;;  %2809 = vmatprep.subr.mxu0 %v4287_v31 }
 0x5c8   :  { %1463 = vrot.lane.b32.xlu0 %v1429_v3, %s2986_s25  ;;  %v1537_v3 = vld [vmem:[%s4227_s6 + $0x10] sm:$0xff]  ;;  %2743 = vmatprep.subr.mxu1 %v4287_v31  ;;  %v1432_v1 = vadd.f32 %v3786_v28, %v4333_v35  ;;  %v2463_v35 = vld [vmem:[%s4227_s6 + $0x1a8] sm:$0xff] }
 0x5c9   :  { %v3789_v60 = vpop.f32.mrf.mxu0  ;;  %2810 = vmatpush3.msra.mxu0 %v2446_v55  ;;  %2744 = vmatpush3.msra.mxu1 %v1537_v3 }
 0x5ca   :  { %2811 = vmatprep.subr.mxu0 %v4287_v31  ;;  %2745 = vmatprep.subr.mxu1 %v4287_v31 }
 0x5cb   :  { %v2707_v4 = vpop.f32.mrf.mxu0 }
 0x5cc   :  { %v1434_v56 = vadd.f32 %v2707_v4, %v4328_v25  ;;  %v2445_v4 = vld [vmem:[%s4227_s6 + $0x118] sm:$0xff] }
 0x5cd   :  { %v1384_v44 = vpop.f32.mrf.mxu0  ;;  %2812 = vmatpush3.msra.mxu0 %v2445_v4 }
 0x5ce   :  { %v1433_v52 = vadd.f32 %v1384_v44, %v4320_v5  ;;  %v1536_v44 = vld [vmem:[%s4227_s6 + $0x8] sm:$0xff]  ;;  %v2444_v5 = vld [vmem:[%s4227_s6 + $0x110] sm:$0xff]  ;;  %2813 = vmatprep.subr.mxu0 %v4287_v31 }
 0x5cf   :  { %v2710_v16 = vpop.f32.mrf.mxu0  ;;  %2746 = vmatpush3.msra.mxu1 %v1536_v44  ;;  %2814 = vmatpush3.msra.mxu0 %v2444_v5 }
 0x5d0   :  { %1473 = vrot.lane.b32.xlu1 %v1433_v52, %s2987_s0  ;;  %v1436_v26 = vadd.f32 %v2710_v16, %v4329_v9  ;;  %v1535_v52 = vld [vmem:[%s4227_s6] sm:$0xff]  ;;  %2747 = vmatprep.subr.mxu1 %v4287_v31  ;;  %v2443_v16 = vld [vmem:[%s4227_s6 + $0x108] sm:$0xff] }
 0x5d1   :  { %v1394_v34 = vpop.f32.mrf.mxu0  ;;  %2748 = vmatpush3.msra.mxu1 %v1535_v52  ;;  %2815 = vmatprep.subr.mxu0 %v4287_v31 }
 0x5d2   :  { %v1435_v6 = vadd.f32 %v1394_v34, %v4321_v36  ;;  %2752 = vmatprep.subr.mxu1 %v4287_v31  ;;  %2816 = vmatpush3.msra.mxu0 %v2443_v16  ;;  %v2442_v34 = vld [vmem:[%s4227_s6 + $0x100] sm:$0xff] }
 0x5d3   :  { %v2713_v8 = vpop.f32.mrf.mxu0  ;;  %2817 = vmatprep.subr.mxu0 %v4287_v31 }
 0x5d4   :  { %1481 = vrot.lane.b32.xlu0 %v1435_v6, %s2988_s30  ;;  %v1438_v13 = vadd.f32 %v2713_v8, %v4330_v50  ;;  %2818 = vmatpush3.msra.mxu0 %v2442_v34  ;;  %v2978_v50 = vld [vmem:[%s4226_s5 + $0x6] ss:$0 sm:$0xff] }
 0x5d5   :  { %v1404_v10 = vpop.f32.mrf.mxu0  ;;  %2857 = vmatprep.subr.mxu0 %v4287_v31 }
 0x5d6   :  { %v1437_v14 = vadd.f32 %v1404_v10, %v4322_v11  ;;  %v2973_v10 = vld [vmem:[%s4226_s5 + $0x1] ss:$0 sm:$0xff] }
 0x5d7   :  { %v2716_v38 = vpop.f32.mrf.mxu0 }
 0x5d8   :  { %1489 = vrot.lane.b32.xlu1 %v1437_v14, %s2989_s18  ;;  %v1440_v51 = vadd.f32 %v2716_v38, %v4331_v18  ;;  %v2974_v38 = vld [vmem:[%s4226_s5] ss:$0 sm:$0xff] }
 0x5d9   :  { %v1414_v22 = vpop.f32.mrf.mxu0 }
 0x5da   :  { %v1439_v2 = vadd.f32 %v1414_v22, %v4324_v54 }
 0x5dc   :  { %1443 = vrot.lane.b32.xlu1 %v1424_v29, %s2983_s23  ;;  %1497 = vrot.lane.b32.xlu0 %v1439_v2, %s4288_s26  ;;  %v2976_v2 = vld [vmem:[%s4226_s5 + $0x3] ss:$0 sm:$0xff] }
 0x5e0   :  { %1457 = vrot.lane.b32.xlu1 %v1428_v7, %s2985_s29  ;;  %1449 = vrot.lane.b32.xlu0 %v1426_v15, %s2984_s24 }
 0x5e4   :  { %1475 = vrot.lane.b32.xlu1 %v1434_v56, %s2987_s0  ;;  %1465 = vrot.lane.b32.xlu0 %v1430_v62, %s2986_s25  ;;  %v4332_v62 = vld [vmem:[#allocation8_spill] sm:$0xff]  ;;  %v2977_v56 = vld [vmem:[%s4226_s5 + $0x5] ss:$0 sm:$0xff] }
 0x5e5   :  { %v1431_v25 = vadd.f32 %v3789_v60, %v4332_v62  ;;  %v2441_v62 = vld [vmem:[%s4227_s6 + $0xf8] sm:$0xff] }
 0x5e8   :  { %1491 = vrot.lane.b32.xlu1 %v1438_v13, %s2989_s18  ;;  %1483 = vrot.lane.b32.xlu0 %v1436_v26, %s2988_s30 }
 0x5ec   :  { %1499 = vrot.lane.b32.xlu0 %v1440_v51, %s4288_s26 }
 0x62e   :  { %v1442_v36 = vpop.permute.xlu1 %1441 }
 0x62f   :  { %v1445_v22 = vmul.f32 %v2974_v38, %v1442_v36 }
 0x632   :  { %v1448_v6 = vpop.permute.xlu0 %1447 }
 0x633   :  { %v1451_v11 = vmul.f32 %v2973_v10, %v1448_v6 }
 0x635   :  { %v1453_v54 = vadd.f32 %v1451_v11, %v1445_v22 }
 0x636   :  { %v1456_v8 = vpop.permute.xlu1 %1455 }
 0x637   :  { %v1459_v29 = vmul.f32 %v2975_v46, %v1456_v8 }
 0x639   :  { %v1461_v15 = vadd.f32 %v1459_v29, %v1453_v54 }
 0x63a   :  { %v1464_v14 = vpop.permute.xlu0 %1463 }
 0x63b   :  { %v1467_v58 = vmul.f32 %v2976_v2, %v1464_v14 }
 0x63d   :  { %v1469_v7 = vadd.f32 %v1467_v58, %v1461_v15 }
 0x63f   :  { %v1471_v26 = vadd.f32 %v1469_v7, %v1431_v25 }
 0x642   :  { %v1474_v63 = vpop.permute.xlu1 %1473 }
 0x643   :  { %v1477_v9 = vmul.f32 %v2977_v56, %v1474_v63 }
 0x645   :  { %v1479_v51 = vadd.f32 %v1477_v9, %v1471_v26  ;;  %v2439_v9 = vld [vmem:[%s4227_s6 + $0xe8] sm:$0xff]  ;;  %v1895_v26 = vld [vmem:[%s4228_s8] sm:$0xff] }
 0x646   :  { %v1482_v21 = vpop.permute.xlu0 %1481 }
 0x647   :  { %v1485_v13 = vmul.f32 %v2978_v50, %v1482_v21 }
 0x649   :  { %v1487_v33 = vadd.f32 %v1485_v13, %v1479_v51  ;;  %v1894_v13 = vld [vmem:[%s4229_s1] sm:$0x1]  ;;  %v2436_v51 = vld [vmem:[%s4227_s6 + $0xd0] sm:$0xff] }
 0x64a   :  { %v1490_v18 = vpop.permute.xlu1 %1489 }
 0x64b   :  { %v1493_v12 = vmul.f32 %v2979_v43, %v1490_v18  ;;  %v2437_v18 = vld [vmem:[%s4227_s6 + $0xd8] sm:$0xff] }
 0x64d   :  { %v1495_v23 = vadd.f32 %v1493_v12, %v1487_v33  ;;  %v2434_v12 = vld [vmem:[%s4227_s6 + $0xc0] sm:$0xff]  ;;  %v2433_v33 = vld [vmem:[%s4227_s6 + $0xb8] sm:$0xff] }
 0x64e   :  { %v1444_v60 = vpop.permute.xlu1 %1443  ;;  %v1498_v49 = vpop.permute.xlu0 %1497 }
 0x64f   :  { %v1501_v19 = vmul.f32 %v2980_v53, %v1498_v49  ;;  %v1446_v48 = vmul.f32 %v2974_v38, %v1444_v60  ;;  %v2432_v60 = vld [vmem:[%s4227_s6 + $0xb0] sm:$0xff]  ;;  %v2431_v49 = vld [vmem:[%s4227_s6 + $0xa8] sm:$0xff] }
 0x651   :  { %v1503_v27 = vadd.f32 %v1501_v19, %v1495_v23  ;;  %v2430_v23 = vld [vmem:[%s4227_s6 + $0xa0] sm:$0xff]  ;;  %v2428_v19 = vld [vmem:[%s4227_s6 + $0x90] sm:$0xff] }
 0x652   :  { %v1458_v0 = vpop.permute.xlu1 %1457  ;;  %v1450_v59 = vpop.permute.xlu0 %1449 }
 0x653   :  { %v1505_v17 = vadd.f32 %v1503_v27, %v3315_v24  ;;  %v1452_v45 = vmul.f32 %v2973_v10, %v1450_v59  ;;  %v1460_v37 = vmul.f32 %v2975_v46, %v1458_v0  ;;  %v2427_v27 = vld [vmem:[%s4227_s6 + $0x88] sm:$0xff]  ;;  %v2426_v0 = vld [vmem:[%s4227_s6 + $0x80] sm:$0xff] }
 0x655   :  { %v2424_v30 = vmul.f32 -1.442695, %v1505_v17  ;;  %v1454_v39 = vadd.f32 %v1452_v45, %v1446_v48  ;;  %v2473_v48 = vld [vmem:[%s4227_s6 + $0x1f8] sm:$0xff]  ;;  %v2472_v17 = vld [vmem:[%s4227_s6 + $0x1f0] sm:$0xff]  ;;  %v2471_v45 = vld [vmem:[%s4227_s6 + $0x1e8] sm:$0xff] }
 0x656   :  { %v1476_v47 = vpop.permute.xlu1 %1475  ;;  %v1466_v61 = vpop.permute.xlu0 %1465 }
 0x657   :  { %2961 = vpow2.f32 %v2424_v30  ;;  %v1462_v32 = vadd.f32 %v1460_v37, %v1454_v39  ;;  %v1468_v41 = vmul.f32 %v2976_v2, %v1466_v61  ;;  %v1478_v55 = vmul.f32 %v2977_v56, %v1476_v47  ;;  %v1896_v56 = vld [vmem:[%s4228_s8 + $0x8] sm:$0x3]  ;;  %v2470_v30 = vld [vmem:[%s4227_s6 + $0x1e0] sm:$0xff]  ;;  %v2469_v37 = vld [vmem:[%s4227_s6 + $0x1d8] sm:$0xff] }
 0x658   :  { %v2468_v39 = vld [vmem:[%s4227_s6 + $0x1d0] sm:$0xff]  ;;  %v2467_v47 = vld [vmem:[%s4227_s6 + $0x1c8] sm:$0xff]  ;;  %v2466_v61 = vld [vmem:[%s4227_s6 + $0x1c0] sm:$0xff] }
 0x659   :  { %v1470_v42 = vadd.f32 %v1468_v41, %v1462_v32  ;;  %v2465_v32 = vld [vmem:[%s4227_s6 + $0x1b8] sm:$0xff]  ;;  %v2464_v41 = vld [vmem:[%s4227_s6 + $0x1b0] sm:$0xff] }
 0x65a   :  { %v1484_v40 = vpop.permute.xlu0 %1483  ;;  %v1492_v4 = vpop.permute.xlu1 %1491 }
 0x65b   :  { %v1472_v3 = vadd.f32 %v1470_v42, %v1432_v1  ;;  %v1486_v5 = vmul.f32 %v2978_v50, %v1484_v40  ;;  %v1494_v52 = vmul.f32 %v2979_v43, %v1492_v4  ;;  %v2438_v50 = vld [vmem:[%s4227_s6 + $0xe0] sm:$0xff]  ;;  %v2435_v43 = vld [vmem:[%s4227_s6 + $0xc8] sm:$0xff]  ;;  %v2461_v42 = vld [vmem:[%s4227_s6 + $0x198] sm:$0xff] }
 0x65c   :  { %v2462_v1 = vld [vmem:[%s4227_s6 + $0x1a0] sm:$0xff]  ;;  %v2460_v40 = vld [vmem:[%s4227_s6 + $0x190] sm:$0xff] }
 0x65d   :  { %v1480_v44 = vadd.f32 %v1478_v55, %v1472_v3  ;;  %v2459_v55 = vld [vmem:[%s4227_s6 + $0x188] sm:$0xff]  ;;  %v2458_v3 = vld [vmem:[%s4227_s6 + $0x180] sm:$0xff] }
 0x65e   :  { %v1500_v24 = vpop.permute.xlu0 %1499 }
 0x65f   :  { %v1488_v16 = vadd.f32 %v1486_v5, %v1480_v44  ;;  %v1502_v36 = vmul.f32 %v2980_v53, %v1500_v24  ;;  %v2429_v53 = vld [vmem:[%s4227_s6 + $0x98] sm:$0xff]  ;;  %v1987_v44 = vld [vmem:[%s4230_s11 + $0x10] sm:$0xf]  ;;  %v1986_v5 = vld [vmem:[%s4230_s11 + $0x8] sm:$0xff] }
 0x660   :  { %v1985_v24 = vld [vmem:[%s4230_s11] sm:$0xff] }
 0x661   :  { %v1496_v34 = vadd.f32 %v1494_v52, %v1488_v16 }
 0x663   :  { %v1504_v6 = vadd.f32 %v1502_v36, %v1496_v34 }
 0x664   :  { %v2962_v8 = vpop.eup %2961 }
 0x665   :  { %v1506_v10 = vadd.f32 %v1504_v6, %v3360_v57  ;;  %v1513_v11 = vadd.f32 1.0, %v2962_v8  ;;  %v1897_v6 = vld [vmem:[%s4231_s9] sm:$0x1] }
 0x667   :  { %v2425_v14 = vmul.f32 -1.442695, %v1506_v10  ;;  %2963 = vtanh.f32 %v1506_v10 }
 0x668   :  { %2965 = vrcp.f32 %v1513_v11 }
 0x669   :  { %2967 = vpow2.f32 %v2425_v14 }
 0x674   :  { %v2964_v28 = vpop.eup %2963 }
 0x675   :  { %v1522_v38 = vrot.slane %v2964_v28, 4  ;;  %v2966_v22 = vpop.eup %2965  ;;  %v1984_v28 = vld [vmem:[%s4232_s10 + $0x38] sm:$0xff] }
 0x676   :  { %v2968_v29 = vpop.eup %2967  ;;  %v1520_v54 = vmul.f32 %v2966_v22, %v3739_v20  ;;  %v2440_v20 = vld [vmem:[%s4227_s6 + $0xf0] sm:$0xff] }
 0x677   :  { %v1524_v46 = vmul.f32 %v2966_v22, %v1522_v38  ;;  %v1514_v58 = vadd.f32 1.0, %v2968_v29  ;;  %v1983_v38 = vld [vmem:[%s4232_s10 + $0x30] sm:$0xff]  ;;  %v1982_v22 = vld [vmem:[%s4232_s10 + $0x28] sm:$0xff]  ;;  %v1980_v29 = vld [vmem:[%s4232_s10 + $0x18] sm:$0xff] }
 0x679   :  { %v1526_v2 = vrot.slane %v1524_v46, 4  ;;  %v1981_v46 = vld [vmem:[%s4232_s10 + $0x20] sm:$0xff] }
 0x67b   :  { %v1528_v15 = vadd.f32 %v1526_v2, %v1520_v54  ;;  %v1979_v54 = vld [vmem:[%s4232_s10 + $0x10] sm:$0xff]  ;;  %v1978_v2 = vld [vmem:[%s4232_s10 + $0x8] sm:$0xff] }
 0x67d   :  { %2969 = vtanh.f32 %v1528_v15 }
 0x67e   :  { %2971 = vrcp.f32 %v1514_v58  ;;  %v1977_v58 = vld [vmem:[%s4232_s10] sm:$0xff] }
 0x68a   :  { %v2970_v63 = vpop.eup %2969 }
 0x68b   :  { %v1531_v7 = vrot.slane %v2970_v63, 4  ;;  %v2972_v57 = vpop.eup %2971 }
 0x68d   :  { %v3978_v21 = vmul.f32 %v2972_v57, %v1531_v7  ;;  %v1534_v7 = vld [vmem:[%s4233_s7] sm:$0x1] }
 0x68f   :  { %2750 = vmatmul.mubr.f32.vlgmr.msra.gmra.mxu1 %v3978_v21  ;;  %v1730_v25 = vrot.slane %v3978_v21, 2  ;;  %v1640_v59 = vrot.slane %v3978_v21, 1  ;;  %v1820_v4 = vrot.slane %v3978_v21, 3 }
 0x690   :  { %2753 = vmatpush3.msra.mxu1 %v2441_v62  ;;  %2784 = vmatprep.mubr.msk.f32.mxu1 %vm2991_vm4, %v4287_v31 }
 0x691   :  { %2754 = vmatprep.subr.mxu1 %v4287_v31  ;;  %2820 = vmatmul.mubr.f32.vlgmr.msra.gmra.mxu0 %v1730_v25 }
 0x692   :  { %2755 = vmatpush3.msra.mxu1 %v2440_v20  ;;  %2858 = vmatpush3.msk.msra.mxu0 %vm1902_vm5, %v1896_v56 }
 0x693   :  { %2756 = vmatprep.subr.mxu1 %v4287_v31  ;;  %2859 = vmatprep.subr.mxu0 %v4287_v31 }
 0x694   :  { %2757 = vmatpush3.msra.mxu1 %v2439_v9  ;;  %2860 = vmatpush3.msra.mxu0 %v1895_v26  ;;  %v2145_v26 = vld [vmem:[%s4234_s13 + $0x18] sm:$0xff] }
 0x695   :  { %2758 = vmatprep.subr.mxu1 %v4287_v31  ;;  %2861 = vmatprep.mubr.msk.f32.mxu0 %vm2991_vm4, %v4287_v31 }
 0x696   :  { %2759 = vmatpush3.msra.mxu1 %v2438_v50  ;;  %2862 = vmatmul.mubr.msk.f32.vlgmr.msra.gmra.mxu0 %vm1898_vm6, %v1894_v13  ;;  %v2144_v50 = vld [vmem:[%s4234_s13 + $0x10] sm:$0xff]  ;;  %v2143_v13 = vld [vmem:[%s4234_s13 + $0x8] sm:$0xff] }
 0x697   :  { %2760 = vmatprep.subr.mxu1 %v4287_v31  ;;  %2864 = vmatprep.subr.mxu0 %v4287_v31 }
 0x698   :  { %2761 = vmatpush3.msra.mxu1 %v2437_v18  ;;  %2870 = vmatprep.mubr.msk.f32.mxu0 %vm2991_vm4, %v4287_v31  ;;  %v2142_v18 = vld [vmem:[%s4234_s13] sm:$0xff] }
 0x699   :  { %2762 = vmatprep.subr.mxu1 %v4287_v31  ;;  %2865 = vmatpush3.msk.msra.mxu0 %vm723_vm3, %v1987_v44 }
 0x69a   :  { %2763 = vmatpush3.msra.mxu1 %v2436_v51  ;;  %2866 = vmatprep.subr.mxu0 %v4287_v31 }
 0x69b   :  { %2764 = vmatprep.subr.mxu1 %v4287_v31  ;;  %2867 = vmatpush3.msra.mxu0 %v1986_v5 }
 0x69c   :  { %2765 = vmatpush3.msra.mxu1 %v2435_v43  ;;  %2868 = vmatprep.subr.mxu0 %v4287_v31 }
 0x69d   :  { %2766 = vmatprep.subr.mxu1 %v4287_v31  ;;  %2869 = vmatpush3.msra.mxu0 %v1985_v24 }
 0x69e   :  { %2767 = vmatpush3.msra.mxu1 %v2434_v12  ;;  %2873 = vmatprep.subr.mxu0 %v4287_v31 }
 0x69f   :  { %2768 = vmatprep.subr.mxu1 %v4287_v31 }
 0x6a0   :  { %2769 = vmatpush3.msra.mxu1 %v2433_v33  ;;  %v2139_v33 = vld [vmem:[%s4235_s12] sm:$0x1] }
 0x6a1   :  { %2770 = vmatprep.subr.mxu1 %v4287_v31 }
 0x6a2   :  { %2771 = vmatpush3.msra.mxu1 %v2432_v60 }
 0x6a3   :  { %2772 = vmatprep.subr.mxu1 %v4287_v31 }
 0x6a4   :  { %2773 = vmatpush3.msra.mxu1 %v2431_v49 }
 0x6a5   :  { %2774 = vmatprep.subr.mxu1 %v4287_v31 }
 0x6a6   :  { %2775 = vmatpush3.msra.mxu1 %v2430_v23 }
 0x6a7   :  { %2776 = vmatprep.subr.mxu1 %v4287_v31 }
 0x6a8   :  { %2777 = vmatpush3.msra.mxu1 %v2429_v53 }
 0x6a9   :  { %2778 = vmatprep.subr.mxu1 %v4287_v31 }
 0x6aa   :  { %2779 = vmatpush3.msra.mxu1 %v2428_v19  ;;  %v2223_v19 = vld [vmem:[%s4236_s15 + $0x8] sm:$0xff] }
 0x6ab   :  { %2780 = vmatprep.subr.mxu1 %v4287_v31 }
 0x6ac   :  { %2781 = vmatpush3.msra.mxu1 %v2427_v27  ;;  %v2222_v27 = vld [vmem:[%s4236_s15] sm:$0xff] }
 0x6ad   :  { %2782 = vmatprep.subr.mxu1 %v4287_v31 }
 0x6ae   :  { %2783 = vmatpush3.msra.mxu1 %v2426_v0  ;;  %v2146_v0 = vld [vmem:[%s4237_s14] sm:$0x1] }
 0x6af   :  { %2785 = vmatmul.mubr.f32.vlgmr.msra.gmra.mxu1 %v1640_v59  ;;  %2822 = vmatprep.subr.mxu1 %v4287_v31 }
 0x6b0   :  { %2823 = vmatpush3.msra.mxu1 %v2473_v48  ;;  %2854 = vmatprep.mubr.msk.f32.mxu1 %vm2991_vm4, %v4287_v31 }
 0x6b1   :  { %2824 = vmatprep.subr.mxu1 %v4287_v31 }
 0x6b2   :  { %2825 = vmatpush3.msra.mxu1 %v2472_v17 }
 0x6b3   :  { %2826 = vmatprep.subr.mxu1 %v4287_v31 }
 0x6b4   :  { %2827 = vmatpush3.msra.mxu1 %v2471_v45 }
 0x6b5   :  { %2828 = vmatprep.subr.mxu1 %v4287_v31 }
 0x6b6   :  { %2829 = vmatpush3.msra.mxu1 %v2470_v30  ;;  %v2224_v30 = vld [vmem:[%s4238_s16] sm:$0x1] }
 0x6b7   :  { %2830 = vmatprep.subr.mxu1 %v4287_v31 }
 0x6b8   :  { %2831 = vmatpush3.msra.mxu1 %v2469_v37 }
 0x6b9   :  { %2832 = vmatprep.subr.mxu1 %v4287_v31 }
 0x6ba   :  { %2833 = vmatpush3.msra.mxu1 %v2468_v39 }
 0x6bb   :  { %2834 = vmatprep.subr.mxu1 %v4287_v31 }
 0x6bc   :  { %2835 = vmatpush3.msra.mxu1 %v2467_v47 }
 0x6bd   :  { %2836 = vmatprep.subr.mxu1 %v4287_v31 }
 0x6be   :  { %2837 = vmatpush3.msra.mxu1 %v2466_v61 }
 0x6bf   :  { %2838 = vmatprep.subr.mxu1 %v4287_v31 }
 0x6c0   :  { %2839 = vmatpush3.msra.mxu1 %v2465_v32 }
 0x6c1   :  { %2840 = vmatprep.subr.mxu1 %v4287_v31 }
 0x6c2   :  { %2841 = vmatpush3.msra.mxu1 %v2464_v41 }
 0x6c3   :  { %2842 = vmatprep.subr.mxu1 %v4287_v31 }
 0x6c4   :  { %2843 = vmatpush3.msra.mxu1 %v2463_v35 }
 0x6c5   :  { %2844 = vmatprep.subr.mxu1 %v4287_v31 }
 0x6c6   :  { %2845 = vmatpush3.msra.mxu1 %v2462_v1 }
 0x6c7   :  { %2846 = vmatprep.subr.mxu1 %v4287_v31 }
 0x6c8   :  { %2847 = vmatpush3.msra.mxu1 %v2461_v42 }
 0x6c9   :  { %2848 = vmatprep.subr.mxu1 %v4287_v31 }
 0x6ca   :  { %2849 = vmatpush3.msra.mxu1 %v2460_v40 }
 0x6cb   :  { %2850 = vmatprep.subr.mxu1 %v4287_v31 }
 0x6cc   :  { %2851 = vmatpush3.msra.mxu1 %v2459_v55 }
 0x6cd   :  { %2852 = vmatprep.subr.mxu1 %v4287_v31 }
 0x6ce   :  { %2853 = vmatpush3.msra.mxu1 %v2458_v3 }
 0x6cf   :  { %2855 = vmatmul.mubr.f32.vlgmr.msra.gmra.mxu1 %v1820_v4  ;;  %2903 = vmatprep.subr.mxu1 %v4287_v31 }
 0x6d0   :  { %2907 = vmatprep.mubr.msk.f32.mxu1 %vm2991_vm4, %v4287_v31  ;;  %2904 = vmatpush3.msra.mxu1 %v2223_v19 }
 0x6d1   :  { %2905 = vmatprep.subr.mxu1 %v4287_v31 }
 0x6d2   :  { %2906 = vmatpush3.msra.mxu1 %v2222_v27 }
 0x74f   :  { %v1617_v52 = vpop.f32.mrf.mxu1 }
 0x750   :  { %v1621_v57 = vadd.f32 %v1617_v52, %v1534_v7 }
 0x751   :  { %v2751_v16 = vpop.f32.mrf.mxu1  ;;  %v1798_v34 = vpop.f32.mrf.mxu0 }
 0x753   :  { %v2821_v36 = vpop.f32.mrf.mxu0 }
 0x756   :  { %v1972_v8 = vpop.f32.mrf.mxu0 }
 0x757   :  { %v1973_v10 = vadd.f32 %v1972_v8, %v1897_v6 }
 0x758   :  { %v2863_v11 = vpop.f32.mrf.mxu0 }
 0x759   :  { %v1976_v14 = vmax.f32 %v1973_v10, 0.0 }
 0x75b   :  { %2871 = vmatmul.mubr.msk.f32.vlgmr.msra.gmra.mxu0 %vm1988_vm7, %v1976_v14 }
 0x75c   :  { %2874 = vmatpush3.msra.mxu0 %v1984_v28  ;;  %2889 = vmatprep.mubr.msk.f32.mxu0 %vm2991_vm4, %v4287_v31 }
 0x75d   :  { %2875 = vmatprep.subr.mxu0 %v4287_v31 }
 0x75e   :  { %2876 = vmatpush3.msra.mxu0 %v1983_v38 }
 0x75f   :  { %2877 = vmatprep.subr.mxu0 %v4287_v31 }
 0x760   :  { %2878 = vmatpush3.msra.mxu0 %v1982_v22 }
 0x761   :  { %2879 = vmatprep.subr.mxu0 %v4287_v31 }
 0x762   :  { %2880 = vmatpush3.msra.mxu0 %v1981_v46 }
 0x763   :  { %2881 = vmatprep.subr.mxu0 %v4287_v31 }
 0x764   :  { %2882 = vmatpush3.msra.mxu0 %v1980_v29 }
 0x765   :  { %2883 = vmatprep.subr.mxu0 %v4287_v31 }
 0x766   :  { %2884 = vmatpush3.msra.mxu0 %v1979_v54 }
 0x767   :  { %2885 = vmatprep.subr.mxu0 %v4287_v31 }
 0x768   :  { %2886 = vmatpush3.msra.mxu0 %v1978_v2 }
 0x769   :  { %2887 = vmatprep.subr.mxu0 %v4287_v31 }
 0x76a   :  { %2888 = vmatpush3.msra.mxu0 %v1977_v58 }
 0x76b   :  { %2892 = vmatprep.subr.mxu0 %v4287_v31 }
 0x76f   :  { %v1708_v15 = vpop.f32.mrf.mxu1 }
 0x770   :  { %v1712_v21 = vadd.f32 %v1708_v15, %v1621_v57 }
 0x771   :  { %v2786_v63 = vpop.f32.mrf.mxu1 }
 0x772   :  { %v1802_v62 = vadd.f32 %v1798_v34, %v1712_v21 }
 0x78f   :  { %v1888_v20 = vpop.f32.mrf.mxu1 }
 0x790   :  { %v1892_v25 = vadd.f32 %v1888_v20, %v1802_v62 }
 0x791   :  { %v2856_v56 = vpop.f32.mrf.mxu1 }
 0x792   :  { %v1893_v9 = vmax.f32 %v1892_v25, 0.0 }
 0x794   :  { %2890 = vmatmul.mubr.msk.f32.vlgmr.msra.gmra.mxu0 %vm2065_vm8, %v1893_v9 }
 0x795   :  { %2900 = vmatprep.mubr.msk.f32.mxu0 %vm2991_vm4, %v4287_v31  ;;  %2893 = vmatpush3.msra.mxu0 %v2145_v26 }
 0x796   :  { %2894 = vmatprep.subr.mxu0 %v4287_v31 }
 0x797   :  { %2895 = vmatpush3.msra.mxu0 %v2144_v50 }
 0x798   :  { %2896 = vmatprep.subr.mxu0 %v4287_v31 }
 0x799   :  { %2897 = vmatpush3.msra.mxu0 %v2143_v13 }
 0x79a   :  { %2898 = vmatprep.subr.mxu0 %v4287_v31 }
 0x79b   :  { %2899 = vmatpush3.msra.mxu0 %v2142_v18 }
 0x81b   :  { %v2061_v51 = vpop.f32.mrf.mxu0 }
 0x81d   :  { %v2872_v43 = vpop.f32.mrf.mxu0 }
 0x854   :  { %v2135_v12 = vpop.f32.mrf.mxu0 }
 0x855   :  { %v2136_v60 = vadd.f32 %v2135_v12, %v2061_v51 }
 0x856   :  { %v2891_v49 = vpop.f32.mrf.mxu0 }
 0x857   :  { %v2140_v23 = vadd.f32 %v2139_v33, %v2136_v60 }
 0x859   :  { %v2141_v53 = vmax.f32 %v2140_v23, 0.0 }
 0x85b   :  { %2901 = vmatmul.mubr.msk.f32.vlgmr.msra.gmra.mxu0 %vm2147_vm9, %v2141_v53 }
 0x91b   :  { %v2217_v59 = vpop.f32.mrf.mxu0 }
 0x91c   :  { %v2218_v48 = vadd.f32 %v2217_v59, %v2146_v0 }
 0x91d   :  { %v2902_v17 = vpop.f32.mrf.mxu0 }
 0x91e   :  { %v2221_v45 = vmax.f32 %v2218_v48, 0.0 }
 0x920   :  { %2908 = vmatmul.mubr.msk.f32.vlgmr.msra.gmra.mxu1 %vm2225_vm10, %v2221_v45 }
 0x9e0   :  { %v2295_v31 = vpop.f32.mrf.mxu1 }
 0x9e1   :  { %v2296_v37 = vadd.f32 %v2295_v31, %v2224_v30 }
 0x9e2   :  { %v2909_v39 = vpop.f32.mrf.mxu1 }
 0x9e3   :  { %v2299_v47 = vmax.f32 %v2296_v37, 0.0 }
 0x9e5   :  { %2301 = vst.msk [vmem:[%s4239_s17] sm:$0x1] %vm2300_vm11, %v2299_v47 }

</bundles_post_ra>
